<compile_context>
chip_gen: v5e
topology: v5e:2x2
jax: 0.10.0
libtpu: 0.0.40
codegen_flags: <defaults>
</compile_context>

<pallas_src>
import functools
import math

import jax
import jax.numpy as jnp
from jax.experimental import pallas as pl
from jax.experimental.pallas import tpu as pltpu


# ----------------------------------------------------------------------------
# Pallas kernel: one grid step == one (LSTM -> activation -> Linear) layer.
# ----------------------------------------------------------------------------
def stock_agent_kernel(x_ref, wih_ref, whh_ref, bl_ref, wd_ref, bd_ref,
                       o_ref, h_ref, c_ref, xbuf, ybuf, gx_ref,
                       *, seq_len, batch_p, hidden, tanh_layer):
    """x_ref : (S*Bp, H)      input sequence (row index = t*Bp + b), resident
       wih_ref: (1, H, 4H)    this layer's input->gate weights (pre-transposed,
                              g columns pre-scaled by 2)
       whh_ref: (1, H, 4H)    this layer's hidden->gate weights (same packing)
       bl_ref : (1, 1, 4H)    b_ih + b_hh (g block pre-scaled by 2)
       wd_ref : (1, H, H)     dense weights, pre-transposed
       bd_ref : (1, 1, H)     dense bias
       o_ref  : (S*Bp, H)     final output (resident; written on last layer)
       h_ref/c_ref : (Bp, H)  LSTM state carried across layers (grid steps)
       xbuf   : (S*Bp, H)     layer input / dense output slab (carried)
       ybuf   : (S*Bp, H)     per-step hidden states of this layer
       gx_ref : (S*Bp, 4H)    hoisted input-gate projections
    """
    l = pl.program_id(0)
    n_layers = pl.num_programs(0)
    H = hidden

    @pl.when(l == 0)
    def _():
        # Zero-init LSTM state; stage the (padded) input as layer-0's input.
        # Padded batch rows evolve harmless finite garbage (bias-driven) and
        # are stripped outside the kernel.
        xbuf[...] = x_ref[...]
        h_ref[...] = jnp.zeros_like(h_ref)
        c_ref[...] = jnp.zeros_like(c_ref)

    # Hoisted input projection for the whole sequence (off the serial chain):
    # gates_x = x @ Wih^T + (b_ih + b_hh), one (S*Bp, 4H) matmul per layer.
    gx_ref[...] = (jnp.dot(xbuf[...], wih_ref[0],
                           preferred_element_type=jnp.float32)
                   + bl_ref[0])

    whh = whh_ref[0]           # (H, 4H) = (32, 128): single MXU column tile
    h = h_ref[...]
    c = c_ref[...]

    # Recurrence, fully unrolled (seq_len small & static).  Only h @ Whh and
    # the gate nonlinearities sit on the serial chain.
    for t in range(seq_len):
        rows = pl.ds(t * batch_p, batch_p)
        gates = gx_ref[rows, :] + jnp.dot(h, whh,
                                          preferred_element_type=jnp.float32)
        # Single EUP pass over the whole 128-lane gate vreg; the g-gate field
        # was pre-scaled by 2 so tanh(x) = 2*sigmoid(2x) - 1 falls out of it.
        sig = jax.nn.sigmoid(gates)
        i_g = sig[:, 0 * H:1 * H]
        f_g = sig[:, 1 * H:2 * H]
        g_g = 2.0 * sig[:, 2 * H:3 * H] - 1.0
        o_g = sig[:, 3 * H:4 * H]
        c = f_g * c + i_g * g_g
        h = o_g * jnp.tanh(c)
        ybuf[rows, :] = h

    h_ref[...] = h
    c_ref[...] = c

    # Fused activation (tanh on layer `tanh_layer`, relu elsewhere) + Linear
    # over the whole (S*Bp, H) slab.
    @pl.when(l == tanh_layer)
    def _():
        xbuf[...] = jnp.tanh(ybuf[...])

    @pl.when(l != tanh_layer)
    def _():
        xbuf[...] = jnp.maximum(ybuf[...], 0.0)

    out = jnp.dot(xbuf[...], wd_ref[0],
                  preferred_element_type=jnp.float32) + bd_ref[0]
    xbuf[...] = out            # becomes the next layer's input

    @pl.when(l == n_layers - 1)
    def _():
        o_ref[...] = out


def stock_agent_forward(packed, x):
    """x : (seq, batch, length) float32 -> (seq, batch, length) float32."""
    S, B, H = x.shape
    L = packed["wih"].shape[0]
    G = packed["wih"].shape[2]           # 4 * H (= 128 lanes for H=32)
    Bp = max(8, ((B + 7) // 8) * 8)      # pad batch to a full sublane group
    NB = S * Bp

    # Padded batch rows never mix with real rows (row index = t*Bp + b) and
    # are stripped at the end.  Up to Bp=8 real sequences are free.
    x_p = jnp.zeros((S, Bp, H), jnp.float32).at[:, :B, :].set(x)
    x_p = x_p.reshape(NB, H)

    kernel = functools.partial(stock_agent_kernel, seq_len=S, batch_p=Bp,
                               hidden=H, tanh_layer=4)

    # TODO(synk): for large batches on v7x, add a parallel grid axis over
    # batch groups to use the second TensorCore; pointless at B=2 (Bp=8).
    out_p = pl.pallas_call(
        kernel,
        out_shape=jax.ShapeDtypeStruct((NB, H), jnp.float32),
        grid_spec=pltpu.PrefetchScalarGridSpec(
            num_scalar_prefetch=0,
            grid=(L,),                                    # layer axis
            in_specs=[
                pl.BlockSpec((NB, H), lambda l: (0, 0)),      # x (resident)
                pl.BlockSpec((1, H, G), lambda l: (l, 0, 0)), # wih[l]
                pl.BlockSpec((1, H, G), lambda l: (l, 0, 0)), # whh[l]
                pl.BlockSpec((1, 1, G), lambda l: (l, 0, 0)), # bias[l]
                pl.BlockSpec((1, H, H), lambda l: (l, 0, 0)), # wd[l]
                pl.BlockSpec((1, 1, H), lambda l: (l, 0, 0)), # bd[l]
            ],
            out_specs=pl.BlockSpec((NB, H), lambda l: (0, 0)),
            scratch_shapes=[
                pltpu.VMEM((Bp, H), jnp.float32),    # h (carried)
                pltpu.VMEM((Bp, H), jnp.float32),    # c (carried)
                pltpu.VMEM((NB, H), jnp.float32),    # layer activation slab
                pltpu.VMEM((NB, H), jnp.float32),    # per-step hidden states
                pltpu.VMEM((NB, G), jnp.float32),    # hoisted gate projections
            ]),
        compiler_params=pltpu.CompilerParams(
            dimension_semantics=("arbitrary",)),      # sequential: carried state
    )(x_p, packed["wih"], packed["whh"], packed["bl"],
      packed["wd"], packed["bd"])

    return out_p.reshape(S, Bp, H)[:, :B, :]


# ----------------------------------------------------------------------------
# Parameters: PyTorch-style init (U(-1/sqrt(H), 1/sqrt(H))) + TPU packing
# ----------------------------------------------------------------------------
def init_params(key, H):
    bound = 1.0 / math.sqrt(H)
    lstm, dense = [], []
    for _ in range(6):
        key, k1, k2, k3, k4, k5, k6 = jax.random.split(key, 7)
        w_ih = jax.random.uniform(k1, (4 * H, H), jnp.float32, -bound, bound)
        w_hh = jax.random.uniform(k2, (4 * H, H), jnp.float32, -bound, bound)
        b_ih = jax.random.uniform(k3, (4 * H,), jnp.float32, -bound, bound)
        b_hh = jax.random.uniform(k4, (4 * H,), jnp.float32, -bound, bound)
        w = jax.random.uniform(k5, (H, H), jnp.float32, -bound, bound)
        b = jax.random.uniform(k6, (H,), jnp.float32, -bound, bound)
        lstm.append((w_ih, w_hh, b_ih, b_hh))
        dense.append((w, b))
    return {"lstm": lstm, "dense": dense}


def pack_params(raw):
    """Transpose weights and keep gates at their NATURAL width (4*H = 128
    lanes for H=32, one vreg).  The g-gate (cell-candidate) columns of w_ih,
    w_hh and the bias are pre-scaled by 2 so the kernel can apply a single
    sigmoid to all four gate fields (tanh(x) = 2*sigmoid(2x) - 1)."""
    H = raw["dense"][0][0].shape[0]
    scale = jnp.ones((4 * H,), jnp.float32).at[2 * H:3 * H].set(2.0)

    wih = jnp.stack([w_ih.T * scale[None, :]
                     for (w_ih, _, _, _) in raw["lstm"]])          # (L, H, 4H)
    whh = jnp.stack([w_hh.T * scale[None, :]
                     for (_, w_hh, _, _) in raw["lstm"]])          # (L, H, 4H)
    bl = jnp.stack([((b_ih + b_hh) * scale)[None, :]
                    for (_, _, b_ih, b_hh) in raw["lstm"]])        # (L, 1, 4H)
    wd = jnp.stack([w.T for (w, _) in raw["dense"]])               # (L, H, H)
    bd = jnp.stack([b[None, :] for (_, b) in raw["dense"]])        # (L, 1, H)
    return {"wih": wih, "whh": whh, "bl": bl, "wd": wd, "bd": bd}


# ----------------------------------------------------------------------------
# Pure-JAX reference (no Pallas) for correctness checking
# ----------------------------------------------------------------------------
def reference_forward(raw, x):
    S, B, H = x.shape
    acts = ["relu", "relu", "relu", "relu", "tanh", "relu"]
    h = jnp.zeros((B, H), jnp.float32)
    c = jnp.zeros((B, H), jnp.float32)
    out = x
    for l in range(6):
        w_ih, w_hh, b_ih, b_hh = raw["lstm"][l]
        ys = []
        for t in range(S):
            gates = out[t] @ w_ih.T + b_ih + h @ w_hh.T + b_hh
            i = jax.nn.sigmoid(gates[:, 0 * H:1 * H])
            f = jax.nn.sigmoid(gates[:, 1 * H:2 * H])
            g = jnp.tanh(gates[:, 2 * H:3 * H])
            o = jax.nn.sigmoid(gates[:, 3 * H:4 * H])
            c = f * c + i * g
            h = o * jnp.tanh(c)
            ys.append(h)
        out = jnp.stack(ys, axis=0)
        out = jnp.maximum(out, 0.0) if acts[l] == "relu" else jnp.tanh(out)
        w, b = raw["dense"][l]
        out = out @ w.T + b
    return out


# ----------------------------------------------------------------------------
if __name__ == "__main__":
    length = 32     # LSTM hidden/input size ("length" in the module)
    seq = 8
    batch = 2

    key = jax.random.PRNGKey(0)
    key, pkey, xkey = jax.random.split(key, 3)
    raw = init_params(pkey, length)
    packed = pack_params(raw)

    # layout: x is (seq, batch, length), matching nn.LSTM(batch_first=False).
    x = jax.random.normal(xkey, (seq, batch, length), jnp.float32)

    out = jax.jit(stock_agent_forward)(packed, x)
    out = jax.block_until_ready(out)

    assert out.shape == (seq, batch, length)
    assert jnp.all(jnp.isfinite(out))

    with jax.default_matmul_precision("highest"):
        ref = reference_forward(raw, x)
    err = float(jnp.max(jnp.abs(out - ref)))
    assert err < 2e-2, f"mismatch vs pure-JAX reference: max abs err {err}"

    print("KERNEL_OK")
</pallas_src>

<mosaic_0001>
module attributes {stable_mosaic.version = 11 : i64} {
  func.func @stock_agent_kernel(%arg0: i32, %arg1: memref<64x32xf32, #tpu.memory_space<vmem>>, %arg2: memref<1x32x128xf32, #tpu.memory_space<vmem>>, %arg3: memref<1x32x128xf32, #tpu.memory_space<vmem>>, %arg4: memref<1x1x128xf32, #tpu.memory_space<vmem>>, %arg5: memref<1x32x32xf32, #tpu.memory_space<vmem>>, %arg6: memref<1x1x32xf32, #tpu.memory_space<vmem>>, %arg7: memref<64x32xf32, #tpu.memory_space<vmem>>, %arg8: memref<8x32xf32, #tpu.memory_space<vmem>>, %arg9: memref<8x32xf32, #tpu.memory_space<vmem>>, %arg10: memref<64x32xf32, #tpu.memory_space<vmem>>, %arg11: memref<64x32xf32, #tpu.memory_space<vmem>>, %arg12: memref<64x128xf32, #tpu.memory_space<vmem>>) attributes {dimension_semantics = [#tpu.dimension_semantics<arbitrary>], iteration_bounds = array<i64: 6>, scalar_prefetch = 0 : i64, scratch_operands = 5 : i64, tpu.core_type = #tpu.core_type<tc>, window_params = [{pipeline_mode = #tpu.pipeline_mode<synchronous>, transform_indices = @transform_0, window_bounds = array<i64: 64, 32>}, {transform_indices = @transform_1, window_bounds = array<i64: 1, 32, 128>}, {transform_indices = @transform_2, window_bounds = array<i64: 1, 32, 128>}, {transform_indices = @transform_3, window_bounds = array<i64: 1, 1, 128>}, {transform_indices = @transform_4, window_bounds = array<i64: 1, 32, 32>}, {transform_indices = @transform_5, window_bounds = array<i64: 1, 1, 32>}, {pipeline_mode = #tpu.pipeline_mode<synchronous>, transform_indices = @transform_6, window_bounds = array<i64: 64, 32>}]} {
    %c0_i32 = arith.constant 0 : i32
    %0 = arith.cmpi eq, %arg0, %c0_i32 : i32
    %1 = arith.extui %0 : i1 to i32
    %c0_i32_0 = arith.constant 0 : i32
    %2 = arith.cmpi ne, %1, %c0_i32_0 : i32
    scf.if %2 {
      %c0_93 = arith.constant 0 : index
      %c0_94 = arith.constant 0 : index
      %212 = vector.load %arg1[%c0_93, %c0_94] : memref<64x32xf32, #tpu.memory_space<vmem>>, vector<64x32xf32>
      %c0_95 = arith.constant 0 : index
      %c0_96 = arith.constant 0 : index
      %213 = vector.load %arg10[%c0_95, %c0_96] : memref<64x32xf32, #tpu.memory_space<vmem>>, vector<64x32xf32>
      tpu.vector_store %arg10[%c0_95, %c0_96], %212 {strides = array<i32>} : memref<64x32xf32, #tpu.memory_space<vmem>>, vector<64x32xf32>,
      %cst_97 = arith.constant 0.000000e+00 : f32
      %214 = vector.broadcast %cst_97 : f32 to vector<8x32xf32>
      %c0_98 = arith.constant 0 : index
      %c0_99 = arith.constant 0 : index
      %215 = vector.load %arg8[%c0_98, %c0_99] : memref<8x32xf32, #tpu.memory_space<vmem>>, vector<8x32xf32>
      tpu.vector_store %arg8[%c0_98, %c0_99], %214 {strides = array<i32>} : memref<8x32xf32, #tpu.memory_space<vmem>>, vector<8x32xf32>,
      %cst_100 = arith.constant 0.000000e+00 : f32
      %216 = vector.broadcast %cst_100 : f32 to vector<8x32xf32>
      %c0_101 = arith.constant 0 : index
      %c0_102 = arith.constant 0 : index
      %217 = vector.load %arg9[%c0_101, %c0_102] : memref<8x32xf32, #tpu.memory_space<vmem>>, vector<8x32xf32>
      tpu.vector_store %arg9[%c0_101, %c0_102], %216 {strides = array<i32>} : memref<8x32xf32, #tpu.memory_space<vmem>>, vector<8x32xf32>,
    } else {
    }
    %c0 = arith.constant 0 : index
    %c0_1 = arith.constant 0 : index
    %3 = vector.load %arg10[%c0, %c0_1] : memref<64x32xf32, #tpu.memory_space<vmem>>, vector<64x32xf32>
    %c0_2 = arith.constant 0 : index
    %c0_3 = arith.constant 0 : index
    %c0_4 = arith.constant 0 : index
    %4 = vector.load %arg2[%c0_2, %c0_3, %c0_4] : memref<1x32x128xf32, #tpu.memory_space<vmem>>, vector<1x32x128xf32>
    %5 = vector.shape_cast %4 : vector<1x32x128xf32> to vector<32x128xf32>
    %cst = arith.constant dense<0.000000e+00> : vector<64x128xf32>
    %6 = tpu.matmul %3, %5, %cst {dimension_numbers = #tpu.dot_dimension_numbers<[1], [0], [0], [1], [0, 0, 1, 1], [], []>} : vector<64x32xf32>, vector<32x128xf32>, vector<64x128xf32> -> vector<64x128xf32>
    %c0_5 = arith.constant 0 : index
    %c0_6 = arith.constant 0 : index
    %c0_7 = arith.constant 0 : index
    %7 = vector.load %arg4[%c0_5, %c0_6, %c0_7] : memref<1x1x128xf32, #tpu.memory_space<vmem>>, vector<1x1x128xf32>
    %8 = vector.shape_cast %7 : vector<1x1x128xf32> to vector<1x128xf32>
    %9 = vector.broadcast %8 : vector<1x128xf32> to vector<64x128xf32>
    %10 = arith.addf %6, %9 : vector<64x128xf32>
    %c0_8 = arith.constant 0 : index
    %c0_9 = arith.constant 0 : index
    %11 = vector.load %arg12[%c0_8, %c0_9] : memref<64x128xf32, #tpu.memory_space<vmem>>, vector<64x128xf32>
    tpu.vector_store %arg12[%c0_8, %c0_9], %10 {strides = array<i32>} : memref<64x128xf32, #tpu.memory_space<vmem>>, vector<64x128xf32>,
    %c0_10 = arith.constant 0 : index
    %c0_11 = arith.constant 0 : index
    %c0_12 = arith.constant 0 : index
    %12 = vector.load %arg3[%c0_10, %c0_11, %c0_12] : memref<1x32x128xf32, #tpu.memory_space<vmem>>, vector<1x32x128xf32>
    %13 = vector.shape_cast %12 : vector<1x32x128xf32> to vector<32x128xf32>
    %c0_13 = arith.constant 0 : index
    %c0_14 = arith.constant 0 : index
    %14 = vector.load %arg8[%c0_13, %c0_14] : memref<8x32xf32, #tpu.memory_space<vmem>>, vector<8x32xf32>
    %c0_15 = arith.constant 0 : index
    %c0_16 = arith.constant 0 : index
    %15 = vector.load %arg9[%c0_15, %c0_16] : memref<8x32xf32, #tpu.memory_space<vmem>>, vector<8x32xf32>
    %c0_17 = arith.constant 0 : index
    %c0_18 = arith.constant 0 : index
    %16 = vector.load %arg12[%c0_17, %c0_18] : memref<64x128xf32, #tpu.memory_space<vmem>>, vector<8x128xf32>
    %cst_19 = arith.constant dense<0.000000e+00> : vector<8x128xf32>
    %17 = tpu.matmul %14, %13, %cst_19 {dimension_numbers = #tpu.dot_dimension_numbers<[1], [0], [0], [1], [0, 0, 1, 1], [], []>} : vector<8x32xf32>, vector<32x128xf32>, vector<8x128xf32> -> vector<8x128xf32>
    %18 = arith.addf %16, %17 : vector<8x128xf32>
    %19 = arith.negf %18 : vector<8x128xf32>
    %20 = math.exp %19 : vector<8x128xf32>
    %cst_20 = arith.constant 1.000000e+00 : f32
    %21 = vector.broadcast %cst_20 : f32 to vector<8x128xf32>
    %22 = arith.addf %21, %20 : vector<8x128xf32>
    %23 = arith.divf %21, %22 : vector<8x128xf32>
    %24 = vector.extract_strided_slice %23 {offsets = [0, 0], sizes = [8, 32], strides = [1, 1]} : vector<8x128xf32> to vector<8x32xf32>
    %25 = vector.extract_strided_slice %23 {offsets = [0, 32], sizes = [8, 32], strides = [1, 1]} : vector<8x128xf32> to vector<8x32xf32>
    %26 = vector.extract_strided_slice %23 {offsets = [0, 64], sizes = [8, 32], strides = [1, 1]} : vector<8x128xf32> to vector<8x32xf32>
    %cst_21 = arith.constant 2.000000e+00 : f32
    %27 = vector.broadcast %cst_21 : f32 to vector<8x32xf32>
    %28 = arith.mulf %27, %26 : vector<8x32xf32>
    %cst_22 = arith.constant 1.000000e+00 : f32
    %29 = vector.broadcast %cst_22 : f32 to vector<8x32xf32>
    %30 = arith.subf %28, %29 : vector<8x32xf32>
    %31 = vector.extract_strided_slice %23 {offsets = [0, 96], sizes = [8, 32], strides = [1, 1]} : vector<8x128xf32> to vector<8x32xf32>
    %32 = arith.mulf %25, %15 : vector<8x32xf32>
    %33 = arith.mulf %24, %30 : vector<8x32xf32>
    %34 = arith.addf %32, %33 : vector<8x32xf32>
    %35 = math.tanh %34 : vector<8x32xf32>
    %36 = arith.mulf %31, %35 : vector<8x32xf32>
    %c0_23 = arith.constant 0 : index
    %c0_24 = arith.constant 0 : index
    %37 = vector.load %arg11[%c0_23, %c0_24] : memref<64x32xf32, #tpu.memory_space<vmem>>, vector<8x32xf32>
    tpu.vector_store %arg11[%c0_23, %c0_24], %36 {strides = array<i32>} : memref<64x32xf32, #tpu.memory_space<vmem>>, vector<8x32xf32>,
    %c8 = arith.constant 8 : index
    %c0_25 = arith.constant 0 : index
    %38 = vector.load %arg12[%c8, %c0_25] : memref<64x128xf32, #tpu.memory_space<vmem>>, vector<8x128xf32>
    %cst_26 = arith.constant dense<0.000000e+00> : vector<8x128xf32>
    %39 = tpu.matmul %36, %13, %cst_26 {dimension_numbers = #tpu.dot_dimension_numbers<[1], [0], [0], [1], [0, 0, 1, 1], [], []>} : vector<8x32xf32>, vector<32x128xf32>, vector<8x128xf32> -> vector<8x128xf32>
    %40 = arith.addf %38, %39 : vector<8x128xf32>
    %41 = arith.negf %40 : vector<8x128xf32>
    %42 = math.exp %41 : vector<8x128xf32>
    %cst_27 = arith.constant 1.000000e+00 : f32
    %43 = vector.broadcast %cst_27 : f32 to vector<8x128xf32>
    %44 = arith.addf %43, %42 : vector<8x128xf32>
    %45 = arith.divf %43, %44 : vector<8x128xf32>
    %46 = vector.extract_strided_slice %45 {offsets = [0, 0], sizes = [8, 32], strides = [1, 1]} : vector<8x128xf32> to vector<8x32xf32>
    %47 = vector.extract_strided_slice %45 {offsets = [0, 32], sizes = [8, 32], strides = [1, 1]} : vector<8x128xf32> to vector<8x32xf32>
    %48 = vector.extract_strided_slice %45 {offsets = [0, 64], sizes = [8, 32], strides = [1, 1]} : vector<8x128xf32> to vector<8x32xf32>
    %cst_28 = arith.constant 2.000000e+00 : f32
    %49 = vector.broadcast %cst_28 : f32 to vector<8x32xf32>
    %50 = arith.mulf %49, %48 : vector<8x32xf32>
    %cst_29 = arith.constant 1.000000e+00 : f32
    %51 = vector.broadcast %cst_29 : f32 to vector<8x32xf32>
    %52 = arith.subf %50, %51 : vector<8x32xf32>
    %53 = vector.extract_strided_slice %45 {offsets = [0, 96], sizes = [8, 32], strides = [1, 1]} : vector<8x128xf32> to vector<8x32xf32>
    %54 = arith.mulf %47, %34 : vector<8x32xf32>
    %55 = arith.mulf %46, %52 : vector<8x32xf32>
    %56 = arith.addf %54, %55 : vector<8x32xf32>
    %57 = math.tanh %56 : vector<8x32xf32>
    %58 = arith.mulf %53, %57 : vector<8x32xf32>
    %c8_30 = arith.constant 8 : index
    %c0_31 = arith.constant 0 : index
    %59 = vector.load %arg11[%c8_30, %c0_31] : memref<64x32xf32, #tpu.memory_space<vmem>>, vector<8x32xf32>
    tpu.vector_store %arg11[%c8_30, %c0_31], %58 {strides = array<i32>} : memref<64x32xf32, #tpu.memory_space<vmem>>, vector<8x32xf32>,
    %c16 = arith.constant 16 : index
    %c0_32 = arith.constant 0 : index
    %60 = vector.load %arg12[%c16, %c0_32] : memref<64x128xf32, #tpu.memory_space<vmem>>, vector<8x128xf32>
    %cst_33 = arith.constant dense<0.000000e+00> : vector<8x128xf32>
    %61 = tpu.matmul %58, %13, %cst_33 {dimension_numbers = #tpu.dot_dimension_numbers<[1], [0], [0], [1], [0, 0, 1, 1], [], []>} : vector<8x32xf32>, vector<32x128xf32>, vector<8x128xf32> -> vector<8x128xf32>
    %62 = arith.addf %60, %61 : vector<8x128xf32>
    %63 = arith.negf %62 : vector<8x128xf32>
    %64 = math.exp %63 : vector<8x128xf32>
    %cst_34 = arith.constant 1.000000e+00 : f32
    %65 = vector.broadcast %cst_34 : f32 to vector<8x128xf32>
    %66 = arith.addf %65, %64 : vector<8x128xf32>
    %67 = arith.divf %65, %66 : vector<8x128xf32>
    %68 = vector.extract_strided_slice %67 {offsets = [0, 0], sizes = [8, 32], strides = [1, 1]} : vector<8x128xf32> to vector<8x32xf32>
    %69 = vector.extract_strided_slice %67 {offsets = [0, 32], sizes = [8, 32], strides = [1, 1]} : vector<8x128xf32> to vector<8x32xf32>
    %70 = vector.extract_strided_slice %67 {offsets = [0, 64], sizes = [8, 32], strides = [1, 1]} : vector<8x128xf32> to vector<8x32xf32>
    %cst_35 = arith.constant 2.000000e+00 : f32
    %71 = vector.broadcast %cst_35 : f32 to vector<8x32xf32>
    %72 = arith.mulf %71, %70 : vector<8x32xf32>
    %cst_36 = arith.constant 1.000000e+00 : f32
    %73 = vector.broadcast %cst_36 : f32 to vector<8x32xf32>
    %74 = arith.subf %72, %73 : vector<8x32xf32>
    %75 = vector.extract_strided_slice %67 {offsets = [0, 96], sizes = [8, 32], strides = [1, 1]} : vector<8x128xf32> to vector<8x32xf32>
    %76 = arith.mulf %69, %56 : vector<8x32xf32>
    %77 = arith.mulf %68, %74 : vector<8x32xf32>
    %78 = arith.addf %76, %77 : vector<8x32xf32>
    %79 = math.tanh %78 : vector<8x32xf32>
    %80 = arith.mulf %75, %79 : vector<8x32xf32>
    %c16_37 = arith.constant 16 : index
    %c0_38 = arith.constant 0 : index
    %81 = vector.load %arg11[%c16_37, %c0_38] : memref<64x32xf32, #tpu.memory_space<vmem>>, vector<8x32xf32>
    tpu.vector_store %arg11[%c16_37, %c0_38], %80 {strides = array<i32>} : memref<64x32xf32, #tpu.memory_space<vmem>>, vector<8x32xf32>,
    %c24 = arith.constant 24 : index
    %c0_39 = arith.constant 0 : index
    %82 = vector.load %arg12[%c24, %c0_39] : memref<64x128xf32, #tpu.memory_space<vmem>>, vector<8x128xf32>
    %cst_40 = arith.constant dense<0.000000e+00> : vector<8x128xf32>
    %83 = tpu.matmul %80, %13, %cst_40 {dimension_numbers = #tpu.dot_dimension_numbers<[1], [0], [0], [1], [0, 0, 1, 1], [], []>} : vector<8x32xf32>, vector<32x128xf32>, vector<8x128xf32> -> vector<8x128xf32>
    %84 = arith.addf %82, %83 : vector<8x128xf32>
    %85 = arith.negf %84 : vector<8x128xf32>
    %86 = math.exp %85 : vector<8x128xf32>
    %cst_41 = arith.constant 1.000000e+00 : f32
    %87 = vector.broadcast %cst_41 : f32 to vector<8x128xf32>
    %88 = arith.addf %87, %86 : vector<8x128xf32>
    %89 = arith.divf %87, %88 : vector<8x128xf32>
    %90 = vector.extract_strided_slice %89 {offsets = [0, 0], sizes = [8, 32], strides = [1, 1]} : vector<8x128xf32> to vector<8x32xf32>
    %91 = vector.extract_strided_slice %89 {offsets = [0, 32], sizes = [8, 32], strides = [1, 1]} : vector<8x128xf32> to vector<8x32xf32>
    %92 = vector.extract_strided_slice %89 {offsets = [0, 64], sizes = [8, 32], strides = [1, 1]} : vector<8x128xf32> to vector<8x32xf32>
    %cst_42 = arith.constant 2.000000e+00 : f32
    %93 = vector.broadcast %cst_42 : f32 to vector<8x32xf32>
    %94 = arith.mulf %93, %92 : vector<8x32xf32>
    %cst_43 = arith.constant 1.000000e+00 : f32
    %95 = vector.broadcast %cst_43 : f32 to vector<8x32xf32>
    %96 = arith.subf %94, %95 : vector<8x32xf32>
    %97 = vector.extract_strided_slice %89 {offsets = [0, 96], sizes = [8, 32], strides = [1, 1]} : vector<8x128xf32> to vector<8x32xf32>
    %98 = arith.mulf %91, %78 : vector<8x32xf32>
    %99 = arith.mulf %90, %96 : vector<8x32xf32>
    %100 = arith.addf %98, %99 : vector<8x32xf32>
    %101 = math.tanh %100 : vector<8x32xf32>
    %102 = arith.mulf %97, %101 : vector<8x32xf32>
    %c24_44 = arith.constant 24 : index
    %c0_45 = arith.constant 0 : index
    %103 = vector.load %arg11[%c24_44, %c0_45] : memref<64x32xf32, #tpu.memory_space<vmem>>, vector<8x32xf32>
    tpu.vector_store %arg11[%c24_44, %c0_45], %102 {strides = array<i32>} : memref<64x32xf32, #tpu.memory_space<vmem>>, vector<8x32xf32>,
    %c32 = arith.constant 32 : index
    %c0_46 = arith.constant 0 : index
    %104 = vector.load %arg12[%c32, %c0_46] : memref<64x128xf32, #tpu.memory_space<vmem>>, vector<8x128xf32>
    %cst_47 = arith.constant dense<0.000000e+00> : vector<8x128xf32>
    %105 = tpu.matmul %102, %13, %cst_47 {dimension_numbers = #tpu.dot_dimension_numbers<[1], [0], [0], [1], [0, 0, 1, 1], [], []>} : vector<8x32xf32>, vector<32x128xf32>, vector<8x128xf32> -> vector<8x128xf32>
    %106 = arith.addf %104, %105 : vector<8x128xf32>
    %107 = arith.negf %106 : vector<8x128xf32>
    %108 = math.exp %107 : vector<8x128xf32>
    %cst_48 = arith.constant 1.000000e+00 : f32
    %109 = vector.broadcast %cst_48 : f32 to vector<8x128xf32>
    %110 = arith.addf %109, %108 : vector<8x128xf32>
    %111 = arith.divf %109, %110 : vector<8x128xf32>
    %112 = vector.extract_strided_slice %111 {offsets = [0, 0], sizes = [8, 32], strides = [1, 1]} : vector<8x128xf32> to vector<8x32xf32>
    %113 = vector.extract_strided_slice %111 {offsets = [0, 32], sizes = [8, 32], strides = [1, 1]} : vector<8x128xf32> to vector<8x32xf32>
    %114 = vector.extract_strided_slice %111 {offsets = [0, 64], sizes = [8, 32], strides = [1, 1]} : vector<8x128xf32> to vector<8x32xf32>
    %cst_49 = arith.constant 2.000000e+00 : f32
    %115 = vector.broadcast %cst_49 : f32 to vector<8x32xf32>
    %116 = arith.mulf %115, %114 : vector<8x32xf32>
    %cst_50 = arith.constant 1.000000e+00 : f32
    %117 = vector.broadcast %cst_50 : f32 to vector<8x32xf32>
    %118 = arith.subf %116, %117 : vector<8x32xf32>
    %119 = vector.extract_strided_slice %111 {offsets = [0, 96], sizes = [8, 32], strides = [1, 1]} : vector<8x128xf32> to vector<8x32xf32>
    %120 = arith.mulf %113, %100 : vector<8x32xf32>
    %121 = arith.mulf %112, %118 : vector<8x32xf32>
    %122 = arith.addf %120, %121 : vector<8x32xf32>
    %123 = math.tanh %122 : vector<8x32xf32>
    %124 = arith.mulf %119, %123 : vector<8x32xf32>
    %c32_51 = arith.constant 32 : index
    %c0_52 = arith.constant 0 : index
    %125 = vector.load %arg11[%c32_51, %c0_52] : memref<64x32xf32, #tpu.memory_space<vmem>>, vector<8x32xf32>
    tpu.vector_store %arg11[%c32_51, %c0_52], %124 {strides = array<i32>} : memref<64x32xf32, #tpu.memory_space<vmem>>, vector<8x32xf32>,
    %c40 = arith.constant 40 : index
    %c0_53 = arith.constant 0 : index
    %126 = vector.load %arg12[%c40, %c0_53] : memref<64x128xf32, #tpu.memory_space<vmem>>, vector<8x128xf32>
    %cst_54 = arith.constant dense<0.000000e+00> : vector<8x128xf32>
    %127 = tpu.matmul %124, %13, %cst_54 {dimension_numbers = #tpu.dot_dimension_numbers<[1], [0], [0], [1], [0, 0, 1, 1], [], []>} : vector<8x32xf32>, vector<32x128xf32>, vector<8x128xf32> -> vector<8x128xf32>
    %128 = arith.addf %126, %127 : vector<8x128xf32>
    %129 = arith.negf %128 : vector<8x128xf32>
    %130 = math.exp %129 : vector<8x128xf32>
    %cst_55 = arith.constant 1.000000e+00 : f32
    %131 = vector.broadcast %cst_55 : f32 to vector<8x128xf32>
    %132 = arith.addf %131, %130 : vector<8x128xf32>
    %133 = arith.divf %131, %132 : vector<8x128xf32>
    %134 = vector.extract_strided_slice %133 {offsets = [0, 0], sizes = [8, 32], strides = [1, 1]} : vector<8x128xf32> to vector<8x32xf32>
    %135 = vector.extract_strided_slice %133 {offsets = [0, 32], sizes = [8, 32], strides = [1, 1]} : vector<8x128xf32> to vector<8x32xf32>
    %136 = vector.extract_strided_slice %133 {offsets = [0, 64], sizes = [8, 32], strides = [1, 1]} : vector<8x128xf32> to vector<8x32xf32>
    %cst_56 = arith.constant 2.000000e+00 : f32
    %137 = vector.broadcast %cst_56 : f32 to vector<8x32xf32>
    %138 = arith.mulf %137, %136 : vector<8x32xf32>
    %cst_57 = arith.constant 1.000000e+00 : f32
    %139 = vector.broadcast %cst_57 : f32 to vector<8x32xf32>
    %140 = arith.subf %138, %139 : vector<8x32xf32>
    %141 = vector.extract_strided_slice %133 {offsets = [0, 96], sizes = [8, 32], strides = [1, 1]} : vector<8x128xf32> to vector<8x32xf32>
    %142 = arith.mulf %135, %122 : vector<8x32xf32>
    %143 = arith.mulf %134, %140 : vector<8x32xf32>
    %144 = arith.addf %142, %143 : vector<8x32xf32>
    %145 = math.tanh %144 : vector<8x32xf32>
    %146 = arith.mulf %141, %145 : vector<8x32xf32>
    %c40_58 = arith.constant 40 : index
    %c0_59 = arith.constant 0 : index
    %147 = vector.load %arg11[%c40_58, %c0_59] : memref<64x32xf32, #tpu.memory_space<vmem>>, vector<8x32xf32>
    tpu.vector_store %arg11[%c40_58, %c0_59], %146 {strides = array<i32>} : memref<64x32xf32, #tpu.memory_space<vmem>>, vector<8x32xf32>,
    %c48 = arith.constant 48 : index
    %c0_60 = arith.constant 0 : index
    %148 = vector.load %arg12[%c48, %c0_60] : memref<64x128xf32, #tpu.memory_space<vmem>>, vector<8x128xf32>
    %cst_61 = arith.constant dense<0.000000e+00> : vector<8x128xf32>
    %149 = tpu.matmul %146, %13, %cst_61 {dimension_numbers = #tpu.dot_dimension_numbers<[1], [0], [0], [1], [0, 0, 1, 1], [], []>} : vector<8x32xf32>, vector<32x128xf32>, vector<8x128xf32> -> vector<8x128xf32>
    %150 = arith.addf %148, %149 : vector<8x128xf32>
    %151 = arith.negf %150 : vector<8x128xf32>
    %152 = math.exp %151 : vector<8x128xf32>
    %cst_62 = arith.constant 1.000000e+00 : f32
    %153 = vector.broadcast %cst_62 : f32 to vector<8x128xf32>
    %154 = arith.addf %153, %152 : vector<8x128xf32>
    %155 = arith.divf %153, %154 : vector<8x128xf32>
    %156 = vector.extract_strided_slice %155 {offsets = [0, 0], sizes = [8, 32], strides = [1, 1]} : vector<8x128xf32> to vector<8x32xf32>
    %157 = vector.extract_strided_slice %155 {offsets = [0, 32], sizes = [8, 32], strides = [1, 1]} : vector<8x128xf32> to vector<8x32xf32>
    %158 = vector.extract_strided_slice %155 {offsets = [0, 64], sizes = [8, 32], strides = [1, 1]} : vector<8x128xf32> to vector<8x32xf32>
    %cst_63 = arith.constant 2.000000e+00 : f32
    %159 = vector.broadcast %cst_63 : f32 to vector<8x32xf32>
    %160 = arith.mulf %159, %158 : vector<8x32xf32>
    %cst_64 = arith.constant 1.000000e+00 : f32
    %161 = vector.broadcast %cst_64 : f32 to vector<8x32xf32>
    %162 = arith.subf %160, %161 : vector<8x32xf32>
    %163 = vector.extract_strided_slice %155 {offsets = [0, 96], sizes = [8, 32], strides = [1, 1]} : vector<8x128xf32> to vector<8x32xf32>
    %164 = arith.mulf %157, %144 : vector<8x32xf32>
    %165 = arith.mulf %156, %162 : vector<8x32xf32>
    %166 = arith.addf %164, %165 : vector<8x32xf32>
    %167 = math.tanh %166 : vector<8x32xf32>
    %168 = arith.mulf %163, %167 : vector<8x32xf32>
    %c48_65 = arith.constant 48 : index
    %c0_66 = arith.constant 0 : index
    %169 = vector.load %arg11[%c48_65, %c0_66] : memref<64x32xf32, #tpu.memory_space<vmem>>, vector<8x32xf32>
    tpu.vector_store %arg11[%c48_65, %c0_66], %168 {strides = array<i32>} : memref<64x32xf32, #tpu.memory_space<vmem>>, vector<8x32xf32>,
    %c56 = arith.constant 56 : index
    %c0_67 = arith.constant 0 : index
    %170 = vector.load %arg12[%c56, %c0_67] : memref<64x128xf32, #tpu.memory_space<vmem>>, vector<8x128xf32>
    %cst_68 = arith.constant dense<0.000000e+00> : vector<8x128xf32>
    %171 = tpu.matmul %168, %13, %cst_68 {dimension_numbers = #tpu.dot_dimension_numbers<[1], [0], [0], [1], [0, 0, 1, 1], [], []>} : vector<8x32xf32>, vector<32x128xf32>, vector<8x128xf32> -> vector<8x128xf32>
    %172 = arith.addf %170, %171 : vector<8x128xf32>
    %173 = arith.negf %172 : vector<8x128xf32>
    %174 = math.exp %173 : vector<8x128xf32>
    %cst_69 = arith.constant 1.000000e+00 : f32
    %175 = vector.broadcast %cst_69 : f32 to vector<8x128xf32>
    %176 = arith.addf %175, %174 : vector<8x128xf32>
    %177 = arith.divf %175, %176 : vector<8x128xf32>
    %178 = vector.extract_strided_slice %177 {offsets = [0, 0], sizes = [8, 32], strides = [1, 1]} : vector<8x128xf32> to vector<8x32xf32>
    %179 = vector.extract_strided_slice %177 {offsets = [0, 32], sizes = [8, 32], strides = [1, 1]} : vector<8x128xf32> to vector<8x32xf32>
    %180 = vector.extract_strided_slice %177 {offsets = [0, 64], sizes = [8, 32], strides = [1, 1]} : vector<8x128xf32> to vector<8x32xf32>
    %cst_70 = arith.constant 2.000000e+00 : f32
    %181 = vector.broadcast %cst_70 : f32 to vector<8x32xf32>
    %182 = arith.mulf %181, %180 : vector<8x32xf32>
    %cst_71 = arith.constant 1.000000e+00 : f32
    %183 = vector.broadcast %cst_71 : f32 to vector<8x32xf32>
    %184 = arith.subf %182, %183 : vector<8x32xf32>
    %185 = vector.extract_strided_slice %177 {offsets = [0, 96], sizes = [8, 32], strides = [1, 1]} : vector<8x128xf32> to vector<8x32xf32>
    %186 = arith.mulf %179, %166 : vector<8x32xf32>
    %187 = arith.mulf %178, %184 : vector<8x32xf32>
    %188 = arith.addf %186, %187 : vector<8x32xf32>
    %189 = math.tanh %188 : vector<8x32xf32>
    %190 = arith.mulf %185, %189 : vector<8x32xf32>
    %c56_72 = arith.constant 56 : index
    %c0_73 = arith.constant 0 : index
    %191 = vector.load %arg11[%c56_72, %c0_73] : memref<64x32xf32, #tpu.memory_space<vmem>>, vector<8x32xf32>
    tpu.vector_store %arg11[%c56_72, %c0_73], %190 {strides = array<i32>} : memref<64x32xf32, #tpu.memory_space<vmem>>, vector<8x32xf32>,
    %c0_74 = arith.constant 0 : index
    %c0_75 = arith.constant 0 : index
    %192 = vector.load %arg8[%c0_74, %c0_75] : memref<8x32xf32, #tpu.memory_space<vmem>>, vector<8x32xf32>
    tpu.vector_store %arg8[%c0_74, %c0_75], %190 {strides = array<i32>} : memref<8x32xf32, #tpu.memory_space<vmem>>, vector<8x32xf32>,
    %c0_76 = arith.constant 0 : index
    %c0_77 = arith.constant 0 : index
    %193 = vector.load %arg9[%c0_76, %c0_77] : memref<8x32xf32, #tpu.memory_space<vmem>>, vector<8x32xf32>
    tpu.vector_store %arg9[%c0_76, %c0_77], %188 {strides = array<i32>} : memref<8x32xf32, #tpu.memory_space<vmem>>, vector<8x32xf32>,
    %c4_i32 = arith.constant 4 : i32
    %194 = arith.cmpi eq, %arg0, %c4_i32 : i32
    %195 = arith.extui %194 : i1 to i32
    %c0_i32_78 = arith.constant 0 : i32
    %196 = arith.cmpi ne, %195, %c0_i32_78 : i32
    scf.if %196 {
      %c0_93 = arith.constant 0 : index
      %c0_94 = arith.constant 0 : index
      %212 = vector.load %arg11[%c0_93, %c0_94] : memref<64x32xf32, #tpu.memory_space<vmem>>, vector<64x32xf32>
      %213 = math.tanh %212 : vector<64x32xf32>
      %c0_95 = arith.constant 0 : index
      %c0_96 = arith.constant 0 : index
      %214 = vector.load %arg10[%c0_95, %c0_96] : memref<64x32xf32, #tpu.memory_space<vmem>>, vector<64x32xf32>
      tpu.vector_store %arg10[%c0_95, %c0_96], %213 {strides = array<i32>} : memref<64x32xf32, #tpu.memory_space<vmem>>, vector<64x32xf32>,
    } else {
    }
    %c4_i32_79 = arith.constant 4 : i32
    %197 = arith.cmpi ne, %arg0, %c4_i32_79 : i32
    %198 = arith.extui %197 : i1 to i32
    %c0_i32_80 = arith.constant 0 : i32
    %199 = arith.cmpi ne, %198, %c0_i32_80 : i32
    scf.if %199 {
      %c0_93 = arith.constant 0 : index
      %c0_94 = arith.constant 0 : index
      %212 = vector.load %arg11[%c0_93, %c0_94] : memref<64x32xf32, #tpu.memory_space<vmem>>, vector<64x32xf32>
      %cst_95 = arith.constant 0.000000e+00 : f32
      %213 = vector.broadcast %cst_95 : f32 to vector<64x32xf32>
      %214 = arith.maximumf %212, %213 : vector<64x32xf32>
      %c0_96 = arith.constant 0 : index
      %c0_97 = arith.constant 0 : index
      %215 = vector.load %arg10[%c0_96, %c0_97] : memref<64x32xf32, #tpu.memory_space<vmem>>, vector<64x32xf32>
      tpu.vector_store %arg10[%c0_96, %c0_97], %214 {strides = array<i32>} : memref<64x32xf32, #tpu.memory_space<vmem>>, vector<64x32xf32>,
    } else {
    }
    %c0_81 = arith.constant 0 : index
    %c0_82 = arith.constant 0 : index
    %200 = vector.load %arg10[%c0_81, %c0_82] : memref<64x32xf32, #tpu.memory_space<vmem>>, vector<64x32xf32>
    %c0_83 = arith.constant 0 : index
    %c0_84 = arith.constant 0 : index
    %c0_85 = arith.constant 0 : index
    %201 = vector.load %arg5[%c0_83, %c0_84, %c0_85] : memref<1x32x32xf32, #tpu.memory_space<vmem>>, vector<1x32x32xf32>
    %202 = vector.shape_cast %201 : vector<1x32x32xf32> to vector<32x32xf32>
    %cst_86 = arith.constant dense<0.000000e+00> : vector<64x32xf32>
    %203 = tpu.matmul %200, %202, %cst_86 {dimension_numbers = #tpu.dot_dimension_numbers<[1], [0], [0], [1], [0, 0, 1, 1], [], []>} : vector<64x32xf32>, vector<32x32xf32>, vector<64x32xf32> -> vector<64x32xf32>
    %c0_87 = arith.constant 0 : index
    %c0_88 = arith.constant 0 : index
    %c0_89 = arith.constant 0 : index
    %204 = vector.load %arg6[%c0_87, %c0_88, %c0_89] : memref<1x1x32xf32, #tpu.memory_space<vmem>>, vector<1x1x32xf32>
    %205 = vector.shape_cast %204 : vector<1x1x32xf32> to vector<1x32xf32>
    %206 = vector.broadcast %205 : vector<1x32xf32> to vector<64x32xf32>
    %207 = arith.addf %203, %206 : vector<64x32xf32>
    %c0_90 = arith.constant 0 : index
    %c0_91 = arith.constant 0 : index
    %208 = vector.load %arg10[%c0_90, %c0_91] : memref<64x32xf32, #tpu.memory_space<vmem>>, vector<64x32xf32>
    tpu.vector_store %arg10[%c0_90, %c0_91], %207 {strides = array<i32>} : memref<64x32xf32, #tpu.memory_space<vmem>>, vector<64x32xf32>,
    %c5_i32 = arith.constant 5 : i32
    %209 = arith.cmpi eq, %arg0, %c5_i32 : i32
    %210 = arith.extui %209 : i1 to i32
    %c0_i32_92 = arith.constant 0 : i32
    %211 = arith.cmpi ne, %210, %c0_i32_92 : i32
    scf.if %211 {
      %c0_93 = arith.constant 0 : index
      %c0_94 = arith.constant 0 : index
      %212 = vector.load %arg7[%c0_93, %c0_94] : memref<64x32xf32, #tpu.memory_space<vmem>>, vector<64x32xf32>
      tpu.vector_store %arg7[%c0_93, %c0_94], %207 {strides = array<i32>} : memref<64x32xf32, #tpu.memory_space<vmem>>, vector<64x32xf32>,
    } else {
    }
    return
  }
  func.func @transform_0(%arg0: i32) -> (i32, i32) {
    %c0_i32 = arith.constant 0 : i32
    %c0_i32_0 = arith.constant 0 : i32
    %c0_i32_1 = arith.constant 0 : i32
    return %c0_i32, %c0_i32_0 : i32, i32
  }
  func.func @transform_1(%arg0: i32) -> (i32, i32, i32) {
    %c0_i32 = arith.constant 0 : i32
    %c0_i32_0 = arith.constant 0 : i32
    %c0_i32_1 = arith.constant 0 : i32
    return %arg0, %c0_i32, %c0_i32_0 : i32, i32, i32
  }
  func.func @transform_2(%arg0: i32) -> (i32, i32, i32) {
    %c0_i32 = arith.constant 0 : i32
    %c0_i32_0 = arith.constant 0 : i32
    %c0_i32_1 = arith.constant 0 : i32
    return %arg0, %c0_i32, %c0_i32_0 : i32, i32, i32
  }
  func.func @transform_3(%arg0: i32) -> (i32, i32, i32) {
    %c0_i32 = arith.constant 0 : i32
    %c0_i32_0 = arith.constant 0 : i32
    %c0_i32_1 = arith.constant 0 : i32
    return %arg0, %c0_i32, %c0_i32_0 : i32, i32, i32
  }
  func.func @transform_4(%arg0: i32) -> (i32, i32, i32) {
    %c0_i32 = arith.constant 0 : i32
    %c0_i32_0 = arith.constant 0 : i32
    %c0_i32_1 = arith.constant 0 : i32
    return %arg0, %c0_i32, %c0_i32_0 : i32, i32, i32
  }
  func.func @transform_5(%arg0: i32) -> (i32, i32, i32) {
    %c0_i32 = arith.constant 0 : i32
    %c0_i32_0 = arith.constant 0 : i32
    %c0_i32_1 = arith.constant 0 : i32
    return %arg0, %c0_i32, %c0_i32_0 : i32, i32, i32
  }
  func.func @transform_6(%arg0: i32) -> (i32, i32) {
    %c0_i32 = arith.constant 0 : i32
    %c0_i32_0 = arith.constant 0 : i32
    %c0_i32_1 = arith.constant 0 : i32
    return %c0_i32, %c0_i32_0 : i32, i32
  }
}

</mosaic_0001>

<bundles_post_ra>
// kernel: stock_agent_forward.1
= control target key start
LH: loop header
LB: loop body
LE: loop exit
PB: predicated region body
PF: predicated region fallthrough
CT: control target
= control target key end

     0   :  { %s2062_s0 = inlined_call_operand.vmem [shape: f32[64,32], index: 0, kind: input, shape index: {}]   ;;  %s2063_s1 = inlined_call_operand.hbm [shape: f32[6,32,128], index: 1, kind: input, shape index: {}]   ;;  %s2064_s2 = inlined_call_operand.hbm [shape: f32[6,32,128], index: 2, kind: input, shape index: {}]   ;;  %s2065_s3 = inlined_call_operand.vmem [shape: f32[6,1,128], index: 3, kind: input, shape index: {}]   ;;  %s2066_s4 = inlined_call_operand.hbm [shape: f32[6,32,32], index: 4, kind: input, shape index: {}]   ;;  %s2067_s5 = inlined_call_operand.vmem [shape: f32[6,1,32], index: 5, kind: input, shape index: {}]   ;;  %s2068_s6 = inlined_call_operand.vmem [shape: f32[64,32], index: 6, kind: output, shape index: {}]  }
   0x1   :  { %2069 = sst [smem:[#allocation14_spill]] %s2063_s1 }
   0x2   :  { %2070 = sst [smem:[#allocation15_spill]] %s2064_s2 }
   0x3   :  { %11 = vsyncpa [#allocation8], 0 }
   0x4   :  { %13 = vsyncpa [#allocation8 + $0x1], 0 }
   0x5   :  { %14 = vsyncpa [#allocation10], 0 }
   0x6   :  { %16 = vsyncpa [#allocation10 + $0x1], 0  ;;  %s1656_s21 = smov 0   ;;  %s1658_s22 = smov 0  }
   0x7   :  { %s1660_s23 = smov 0   ;;  %s1662_s24 = smov 0  }
   0x8 LB: > { %s1675_s25 = sadd.s32 4294967295, %s1613_s24   ;;  %s1678_s26 = sadd.s32 1, %s1613_s24   ;;  %s1613_s24 = sphi %s1662_s24, %s2079_s24   ;;  %s1609_s23 = sphi %s1660_s23, %s2078_s23   ;;  %s1605_s22 = sphi %s1658_s22, %s2077_s22   ;;  %s1601_s21 = sphi %s1656_s21, %s2076_s21  }
   0x9   : > { %s47_s27 = ssub.s32 %s1613_s24, %s1678_s26  ;;  %s50_s28 = sadd.s32 1, %s1609_s23 }
   0xa   : > { %p48_p0 = scmp.eq.s32.totalorder %s47_s27, 0  ;;  %p57_p1 = scmp.ne.s32.totalorder %s1609_s23, %s1605_s22 }
   0xb   : > { %p58_p2 = scmp.eq.s32.totalorder %s1613_s24, 0  ;;  %p63_p3 = scmp.ne.s32.totalorder %s1605_s22, %s1601_s21 }
   0xc   : > { %s1688_s29 = scalar_select %p48_p0, %s1609_s23, %s50_s28  }
   0xd   : > { %p59_p4 = por %p58_p2, %p57_p1  ;;  %p64_p5 = scmp.eq.s32.totalorder %s1675_s25, 0 }
   0xe   : > { %p1380_p6 = scmp.lt.s32.totalorder %s1613_s24, 6  ;;  %s215_s7 = sand.u32 1, %s1609_s23  }
   0xf   : > { %p1692_p7 = por %p64_p5, %p63_p3  ;;  %s1699_s8 = sshll.u32 %s215_s7, 5 }
  0x10   : > { %s1702_s9 = sshll.u32 %s1613_s24, 5  ;;  %p1704_p8 = pnand %p1380_p6, %p59_p4 }
  0x11   : > { %s237_s11 = sand.u32 1, %s1613_s24   ;;  %s2073_s2 = sld [smem:[#allocation15_spill]] }
  0x12   : > { %s241_s16 = scalar_lea.vmem [#allocation9], %s1699_s8  ;;  %s1714_s18 = scalar_lea.sflag [#allocation10], %s237_s11 }
  0x13   : > { %s249_s17 = sshll.u32 %s241_s16, 4  ;;  %p1489_p10 = pneg %p1704_p8  ;;  %s250_s17 = int_to_ptr.vmem [resolvable:$true] %s249_s17 }
  0x17   : > { %s246_s14 = scalar_lea.hbm %s2073_s2, %s1702_s9  ;;  %s1492_s28 = scalar_lea.hbm %s2073_s2, 192 }
  0x18   : > { %s247_s15 = sshll.u32 %s246_s14, 4  ;;  %s248_s15 = int_to_ptr.hbm [resolvable:$true] %s247_s15 }
  0x19   : > { %s1485_s19 = sshra.s32 %s248_s15, 4  ;;  %s1486_s19 = int_to_ptr.hbm [resolvable:$true] %s1485_s19 }
  0x1a   : > { %s1487_s20 = scalar_lea.hbm %s1486_s19, 32  ;;  %p1493_p13 = scmp.lt.s32.totalorder %s1486_s19, %s2073_s2 }
  0x1b   : > { %p1488_p9 = scmp.ne.s32.totalorder %s1486_s19, %s1487_s20  ;;  %p1494_p0 = scmp.lt.s32.totalorder %s1492_s28, %s1487_s20 }
  0x1d   : > { %p1490_p11 = pnand %p1489_p10, %p1488_p9  ;;  %p1495_p1 = por %p1494_p0, %p1493_p13 }
  0x1f   : > { %p1491_p12 = pneg %p1490_p11 }
  0x21   : > { %p1496_p2 = pnand %p1495_p1, %p1491_p12 }
  0x23   : > { %1499 = shalt.err (!%p1496_p2)
}
  0x24   : > { %s1615_s11 = smov 128   ;;  %s1616_s14 = smov 8  }
  0x25   : > { %1376 = dma.hbm_to_vmem [thread:$0]  (!%p1704_p8), %s248_s15, 512, %s250_s17, %s1714_s18, %s1615_s11, %s1615_s11, %s1616_s14  }
  0x26   : > { %p1303_p3 = scmp.ge.s32.totalorder %s1613_s24, 1  ;;  %p291_p4 = scmp.lt.s32.totalorder %s1613_s24, 7 }
  0x27   : > { %s2075_s1 = sld [smem:[#allocation14_spill]]  ;;  %s219_s28 = scalar_lea.vmem [#allocation7], %s1699_s8 }
  0x28   : > { %p1735_p5 = pnand %p1303_p3, %p291_p4  ;;  %s227_s12 = sshll.u32 %s219_s28, 4  ;;  %s228_s12 = int_to_ptr.vmem [resolvable:$true] %s227_s12 }
  0x29   : > { %s216_s13 = scalar_lea.sflag [#allocation8], %s215_s7 }
  0x2d   : > { %s224_s21 = scalar_lea.hbm %s2075_s1, %s1702_s9  ;;  %s1522_s19 = scalar_lea.hbm %s2075_s1, 192 }
  0x2e   : > { %s225_s27 = sshll.u32 %s224_s21, 4  ;;  %s226_s27 = int_to_ptr.hbm [resolvable:$true] %s225_s27 }
  0x2f   : > { %s1515_s2 = sshra.s32 %s226_s27, 4  ;;  %s1516_s2 = int_to_ptr.hbm [resolvable:$true] %s1515_s2 }
  0x30   : > { %s1517_s15 = scalar_lea.hbm %s1516_s2, 32  ;;  %p1523_p12 = scmp.lt.s32.totalorder %s1516_s2, %s2075_s1 }
  0x31   : > { %p1518_p6 = scmp.ne.s32.totalorder %s1516_s2, %s1517_s15  ;;  %p1524_p13 = scmp.lt.s32.totalorder %s1522_s19, %s1517_s15 }
  0x33   : > { %p1520_p9 = pnand %p1518_p6, %p1489_p10  ;;  %p1525_p0 = por %p1524_p13, %p1523_p12 }
  0x35   : > { %p1521_p11 = pneg %p1520_p9 }
  0x37   : > { %p1526_p1 = pnand %p1525_p0, %p1521_p11 }
  0x39   : > { %1529 = shalt.err (!%p1526_p1)
}
  0x3a   : > { %1373 = dma.hbm_to_vmem [thread:$0]  (!%p1704_p8), %s226_s27, 512, %s228_s12, %s216_s13, %s1615_s11, %s1615_s11, %s1616_s14  }
  0x3b   : > { %s274_s24 = scalar_lea.hbm %s2066_s4, %s1702_s9  ;;  %s269_s20 = scalar_lea.vmem [#allocation11], %s1699_s8 }
  0x3c   : > { %s275_s17 = sshll.u32 %s274_s24, 4  ;;  %s277_s2 = sshll.u32 %s269_s20, 4  ;;  %s276_s17 = int_to_ptr.hbm [resolvable:$true] %s275_s17  ;;  %s278_s2 = int_to_ptr.vmem [resolvable:$true] %s277_s2 }
  0x3d   : > { %s1545_s15 = sshra.s32 %s276_s17, 4  ;;  %s1552_s27 = scalar_lea.hbm %s2066_s4, 192  ;;  %s1546_s15 = int_to_ptr.hbm [resolvable:$true] %s1545_s15 }
  0x3e   : > { %s1547_s19 = scalar_lea.hbm %s1546_s15, 32  ;;  %p1553_p6 = scmp.lt.s32.totalorder %s1546_s15, %s2066_s4 }
  0x3f   : > { %p1548_p2 = scmp.ne.s32.totalorder %s1546_s15, %s1547_s19  ;;  %p1554_p9 = scmp.lt.s32.totalorder %s1552_s27, %s1547_s19 }
  0x41   : > { %p1550_p3 = pnand %p1548_p2, %p1489_p10  ;;  %p1555_p11 = por %p1554_p9, %p1553_p6 }
  0x43   : > { %p1551_p4 = pneg %p1550_p3 }
  0x45   : > { %p1556_p12 = pnand %p1555_p11, %p1551_p4 }
  0x47   : > { %1559 = shalt.err (!%p1556_p12)
}
  0x48   : > { %1379 = dma.hbm_to_vmem [thread:$0]  (!%p1704_p8), %s276_s17, 512, %s278_s2, %s1714_s18, %s1615_s11, %s1615_s11, %s1616_s14  }
  0x49   : > { %295 = sbr.rel (%p1735_p5) target bundleno = 5172 (0x1434), region = 44  ;;  %s297_s1 = sand.u32 (!%p1735_p5), 1, %s1605_s22  }
  0x4a   : > { %s1304_s8 = sshll.u32 (!%p1735_p5), %s297_s1, 5  ;;  %s298_s9 = scalar_lea.sflag (!%p1735_p5), [#allocation8], %s297_s1 }
  0x4b   : > { %s1783_s7 = scalar_lea.vmem (!%p1735_p5), [#allocation7], %s1304_s8 }
  0x4e   : > { %1592 = dma.done.wait (%p1692_p7), %s298_s9, 512  }
  0x4f   : > { %1594 = vsyncadd (%p1692_p7), %s298_s9, 4294966784  ;;  %s307_s10 = sand.u32 1, %s1675_s25   ;;  %s1790_s18 = scalar_lea.vmem [#allocation9], %s1304_s8 }
  0x50   : > { %s308_s28 = scalar_lea.sflag [#allocation10], %s307_s10 }
  0x51   : > { %1596 = dma.done.wait (%p1692_p7), %s308_s28, 1024  }
  0x52   : > { %1598 = vsyncadd (%p1692_p7), %s308_s28, 4294966272  ;;  %p362_p8 = scmp.lt.s32.totalorder %s1675_s25, 5  ;;  %s1808_s15 = scalar_lea.vmem [#allocation11], %s1304_s8 }
  0x53   : > { %p1307_p10 = scmp.ne.s32.totalorder %s1675_s25, 0 }
  0x54   : > { %s1798_s11 = scalar_select %p362_p8, %s1675_s25, 5 }
  0x55   : > { %371 = sbr.rel (%p1307_p10) target bundleno = 101 (0x65), region = 60 }
  0x56   : > { %s364_s24 = scalar_lea.vmem %s2065_s3, %s1798_s11  ;;  %s367_s2 = scalar_lea.vmem %s2067_s5, %s1798_s11 }
  0x5a   : > { %v372_v0 = vld [vmem:[%s2062_s0] sm:$0xff]  ;;  %vm380_vm0 = vcmask 261120   ;;  %v373_v1 = vld [vmem:[%s2062_s0 + $0x8] sm:$0xff]  ;;  %v374_v2 = vld [vmem:[%s2062_s0 + $0x10] sm:$0xff]  ;;  %v1617_v8 = vmov 0.0  }
  0x5b   : > { %381 = vst.msk [vmem:[#allocation4] sm:$0xff] %vm380_vm0, %v372_v0  ;;  %v375_v3 = vld [vmem:[%s2062_s0 + $0x18] sm:$0xff]  ;;  %v376_v4 = vld [vmem:[%s2062_s0 + $0x20] sm:$0xff]  ;;  %v377_v5 = vld [vmem:[%s2062_s0 + $0x28] sm:$0xff] }
  0x5c   : > { %382 = vst.msk [vmem:[#allocation4 + $0x8] sm:$0xff] %vm380_vm0, %v373_v1  ;;  %v378_v6 = vld [vmem:[%s2062_s0 + $0x30] sm:$0xff]  ;;  %v379_v7 = vld [vmem:[%s2062_s0 + $0x38] sm:$0xff] }
  0x5d   : > { %383 = vst.msk [vmem:[#allocation4 + $0x10] sm:$0xff] %vm380_vm0, %v374_v2 }
  0x5e   : > { %384 = vst.msk [vmem:[#allocation4 + $0x18] sm:$0xff] %vm380_vm0, %v375_v3 }
  0x5f   : > { %385 = vst.msk [vmem:[#allocation4 + $0x20] sm:$0xff] %vm380_vm0, %v376_v4 }
  0x60   : > { %386 = vst.msk [vmem:[#allocation4 + $0x28] sm:$0xff] %vm380_vm0, %v377_v5 }
  0x61   : > { %387 = vst.msk [vmem:[#allocation4 + $0x30] sm:$0xff] %vm380_vm0, %v378_v6 }
  0x62   : > { %388 = vst.msk [vmem:[#allocation4 + $0x38] sm:$0xff] %vm380_vm0, %v379_v7 }
  0x63   : > { %389 = vst.msk [vmem:[#allocation2] sm:$0xff] %vm380_vm0, %v1617_v8 }
  0x64   : > { %390 = vst.msk [vmem:[#allocation3] sm:$0xff] %vm380_vm0, %v1617_v8 }
  0x65 PF: > { %v402_v9 = vld [vmem:[%s1783_s7 + $0x18] sm:$0xff]  ;;  %v401_v10 = vld [vmem:[%s1783_s7 + $0x10] sm:$0xff]  ;;  %v400_v12 = vld [vmem:[%s1783_s7 + $0x8] sm:$0xff]  ;;  %vm407_vm1 = vcmask 261120   ;;  %s1619_s19 = smov 32   ;;  %s1620_s21 = smov 96  }
  0x66   : > { %1356 = vmatpush.msra.mxu2 %v402_v9  ;;  %v1848_v11 = vld [vmem:[%s1790_s18 + $0x18] sm:$0xff]  ;;  %444 = vmatpush.msra.mxu0 %v402_v9  ;;  %v1854_v13 = vld [vmem:[%s1790_s18 + $0x10] sm:$0xff]  ;;  %v399_v14 = vld [vmem:[%s1783_s7] sm:$0xff]  ;;  %p1340_p7 = scmp.ne.s32.totalorder %s1675_s25, 4 }
  0x67   : > { %641 = vmatpush.msra.mxu3 %v1848_v11  ;;  %708 = vmatpush.msra.mxu1 %v1848_v11  ;;  %v1860_v16 = vld [vmem:[%s1790_s18 + $0x8] sm:$0xff]  ;;  %v391_v17 = vld [vmem:[#allocation4] sm:$0xff]  ;;  %v1902_v24 = vld [vmem:[%s364_s24] ss:$0 sm:$0xff]  ;;  %s1618_s24 = smov 64  }
  0x68   : > { %1357 = vmatpush.msra.mxu2 %v401_v10  ;;  %445 = vmatpush.msra.mxu0 %v401_v10  ;;  %v397_v15 = vld [vmem:[#allocation4 + $0x30] sm:$0xff]  ;;  %v1866_v18 = vld [vmem:[%s1790_s18] sm:$0xff]  ;;  %v392_v53 = vld [vmem:[#allocation4 + $0x8] sm:$0xff] }
  0x69   : > { %642 = vmatpush.msra.mxu3 %v1854_v13  ;;  %709 = vmatpush.msra.mxu1 %v1854_v13  ;;  %v398_v19 = vld [vmem:[#allocation4 + $0x38] sm:$0xff] }
  0x6a   : > { %1358 = vmatpush.msra.mxu2 %v400_v12  ;;  %446 = vmatpush.msra.mxu0 %v400_v12  ;;  %v485_v20 = vld [vmem:[#allocation2] sm:$0xff] }
  0x6b   : > { %643 = vmatpush.msra.mxu3 %v1860_v16  ;;  %710 = vmatpush.msra.mxu1 %v1860_v16  ;;  %v486_v43 = vld [vmem:[#allocation3] sm:$0xff] }
  0x6c   : > { %1359 = vmatpush.msra.mxu2 %v399_v14  ;;  %447 = vmatpush.msra.mxu0 %v399_v14 }
  0x6d   : > { %1314 = vmatmul.msk.f32.vlgmr.msra.gmra.mxu2 %vm407_vm1, %v397_v15  ;;  %1308 = vmatmul.msk.f32.vlgmr.msra.gmra.mxu0 %vm407_vm1, %v391_v17 }
  0x6e   : > { %503 = vmatpush.msrb.mxu2 %v1848_v11  ;;  %644 = vmatpush.msra.mxu3 %v1866_v18 }
  0x6f   : > { %711 = vmatpush.msra.mxu1 %v1866_v18 }
  0x70   : > { %842 = vmatpush.msrb.mxu3 %v1848_v11  ;;  %504 = vmatpush.msrb.mxu2 %v1854_v13 }
  0x71   : > { %909 = vmatpush.msrb.mxu1 %v1848_v11 }
  0x72   : > { %843 = vmatpush.msrb.mxu3 %v1854_v13  ;;  %505 = vmatpush.msrb.mxu2 %v1860_v16 }
  0x73   : > { %910 = vmatpush.msrb.mxu1 %v1854_v13 }
  0x74   : > { %844 = vmatpush.msrb.mxu3 %v1860_v16  ;;  %506 = vmatpush.msrb.mxu2 %v1866_v18 }
  0x75   : > { %911 = vmatpush.msrb.mxu1 %v1860_v16  ;;  %1315 = vmatmul.msk.f32.gmra.mxu2 %vm407_vm1, %v398_v19 }
  0x76   : > { %845 = vmatpush.msrb.mxu3 %v1866_v18  ;;  %574 = vmatpush.msra.mxu2 %v1848_v11 }
  0x77   : > { %912 = vmatpush.msrb.mxu1 %v1866_v18  ;;  %1309 = vmatmul.msk.f32.gmra.mxu0 %vm407_vm1, %v392_v53 }
  0x78   : > { %575 = vmatpush.msra.mxu2 %v1854_v13 }
  0x7a   : > { %576 = vmatpush.msra.mxu2 %v1860_v16 }
  0x7c   : > { %577 = vmatpush.msra.mxu2 %v1866_v18 }
  0x7d   : > { %1316 = vmatmul.msk.f32.vlgmr.msrb.gmra.mxu2 %vm407_vm1, %v485_v20 }
  0x7e   : > { %775 = vmatpush.msrb.mxu2 %v1848_v11 }
  0x80   : > { %776 = vmatpush.msrb.mxu2 %v1854_v13 }
  0x82   : > { %777 = vmatpush.msrb.mxu2 %v1860_v16 }
  0x84   : > { %778 = vmatpush.msrb.mxu2 %v1866_v18 }
  0xea   : > { %v449_v23 = vpop.f32.mrf.mxu0 }
  0xeb   : > { %v450_v25 = vadd.f32 %v1902_v24, %v449_v23 }
  0xf0   : > { %v1893_v21 = vpop.f32.mrf.mxu2 }
  0xf4   : > { %v452_v55 = vpop.f32.mrf.mxu0 }
  0xf5   : > { %v453_v56 = vadd.f32 %v1902_v24, %v452_v55 }
  0xf8   : > { %v1895_v22 = vpop.f32.mrf.mxu2 }
 0x100   : > { %v508_v26 = vpop.f32.mrf.mxu2 }
 0x101   : > { %v511_v27 = vadd.f32 %v508_v26, %v450_v25 }
 0x103   : > { %v1317_v28 = vmul.f32 -1.442695, %v511_v27 }
 0x105   : > { %1420 = vpow2.f32 %v1317_v28 }
 0x10b   : > { %v1421_v29 = vpop.eup %1420 }
 0x10c   : > { %v515_v30 = vadd.f32 1.0, %v1421_v29 }
 0x10e   : > { %1422 = vrcp.f32 %v515_v30  ;;  %v527_v34 = vand.u32 2147483648, %v515_v30  ;;  %v525_v36 = vand.u32 2147483647, %v515_v30  ;;  %vm521_vm3 = vweird.f32 %v515_v30 }
 0x110   : > { %v528_v38 = vor.u32 1.1754944e-38, %v527_v34  ;;  %vm526_vm5 = vcmp.eq.f32.partialorder %v525_v36, 8.507059e+37 }
 0x114   : > { %v1423_v31 = vpop.eup %1422 }
 0x115   : > { %v517_v32 = vmul.f32 %v1423_v31, %v515_v30  ;;  %vm522_vm2 = vweird.f32 %v1423_v31 }
 0x116   : > { %vm523_vm4 = vmor %vm521_vm3, %vm522_vm2 }
 0x117   : > { %v518_v33 = vsub.f32 1.0, %v517_v32 }
 0x119   : > { %v519_v35 = vmul.f32 %v1423_v31, %v518_v33 }
 0x11b   : > { %v520_v37 = vadd.f32 %v1423_v31, %v519_v35 }
 0x11d   : > { %v524_v39 = vsel %vm523_vm4, %v1423_v31, %v520_v37 }
 0x11e   : > { %v529_v40 = vsel %vm526_vm5, %v528_v38, %v524_v39 }
 0x11f   : > { %v531_v41 = vmul.f32 2.0, %v529_v40 }
 0x121   : > { %v1318_v42 = vadd.f32 -1.0, %v531_v41 }
 0x123   : > { %539 = vrot.lane.b32.xlu0 %v1318_v42, %s1618_s24 }
 0x12b   : > { %534 = vrot.lane.b32.xlu0 %v486_v43, %s1619_s19 }
 0x195   : > { %v540_v44 = vpop.permute.xlu0 %539 }
 0x196   : > { %v542_v45 = vmul.f32 %v540_v44, %v529_v40 }
 0x198   : > { %544 = vrot.lane.b32.xlu1 %v542_v45, %s1619_s19 }
 0x19d   : > { %v535_v46 = vpop.permute.xlu0 %534 }
 0x19e   : > { %v537_v47 = vmul.f32 %v535_v46, %v529_v40 }
 0x20a   : > { %v545_v48 = vpop.permute.xlu1 %544 }
 0x20b   : > { %v547_v49 = vadd.f32 %v545_v48, %v537_v47  ;;  %v394_v48 = vld [vmem:[#allocation4 + $0x18] sm:$0xff] }
 0x20d   : > { %1424 = vtanh.f32 %v547_v49 }
 0x213   : > { %v1425_v50 = vpop.eup %1424 }
 0x214   : > { %550 = vrot.lane.b32.xlu1 %v1425_v50, %s1618_s24 }
 0x286   : > { %v551_v51 = vpop.permute.xlu1 %550 }
 0x287   : > { %v553_v52 = vmul.f32 %v551_v51, %v529_v40 }
 0x289   : > { %555 = vrot.lane.b32.xlu2 %v553_v52, %s1619_s19 }
 0x2e3   : > { %v556_v54 = vpop.permute.xlu2 %555 }
 0x2e4   : > { %558 = vst.msk [vmem:[#allocation5] sm:$0xff] %vm407_vm1, %v556_v54  ;;  %1319 = vmatmul.msk.f32.vlgmr.msra.gmra.mxu2 %vm407_vm1, %v556_v54 }
 0x2e5   : > { %976 = vmatpush.msra.mxu2 %v1848_v11 }
 0x2e7   : > { %977 = vmatpush.msra.mxu2 %v1854_v13 }
 0x2e9   : > { %978 = vmatpush.msra.mxu2 %v1860_v16 }
 0x2eb   : > { %979 = vmatpush.msra.mxu2 %v1866_v18  ;;  %v393_v18 = vld [vmem:[#allocation4 + $0x10] sm:$0xff] }
 0x2ec   : > { %1310 = vmatmul.msk.f32.gmra.mxu0 %vm407_vm1, %v393_v18 }
 0x2f4   : > { %1311 = vmatmul.msk.f32.gmra.mxu0 %vm407_vm1, %v394_v48 }
 0x367   : > { %v579_v57 = vpop.f32.mrf.mxu2 }
 0x368   : > { %v582_v58 = vadd.f32 %v579_v57, %v453_v56 }
 0x369   : > { %v455_v20 = vpop.f32.mrf.mxu0 }
 0x36a   : > { %v1320_v59 = vmul.f32 -1.442695, %v582_v58  ;;  %v456_v23 = vadd.f32 %v1902_v24, %v455_v20 }
 0x36c   : > { %1426 = vpow2.f32 %v1320_v59 }
 0x371   : > { %v458_v52 = vpop.f32.mrf.mxu0 }
 0x372   : > { %v1427_v60 = vpop.eup %1426  ;;  %v459_v53 = vadd.f32 %v1902_v24, %v458_v52 }
 0x373   : > { %v586_v61 = vadd.f32 1.0, %v1427_v60 }
 0x375   : > { %1428 = vrcp.f32 %v586_v61  ;;  %v598_v1 = vand.u32 2147483648, %v586_v61  ;;  %v596_v3 = vand.u32 2147483647, %v586_v61  ;;  %vm592_vm7 = vweird.f32 %v586_v61 }
 0x377   : > { %v599_v5 = vor.u32 1.1754944e-38, %v598_v1  ;;  %vm597_vm9 = vcmp.eq.f32.partialorder %v596_v3, 8.507059e+37 }
 0x37b   : > { %v1429_v62 = vpop.eup %1428 }
 0x37c   : > { %v588_v63 = vmul.f32 %v1429_v62, %v586_v61  ;;  %vm593_vm6 = vweird.f32 %v1429_v62 }
 0x37d   : > { %vm594_vm8 = vmor %vm592_vm7, %vm593_vm6 }
 0x37e   : > { %v589_v0 = vsub.f32 1.0, %v588_v63 }
 0x380   : > { %v590_v2 = vmul.f32 %v1429_v62, %v589_v0 }
 0x382   : > { %v591_v4 = vadd.f32 %v1429_v62, %v590_v2 }
 0x384   : > { %v595_v6 = vsel %vm594_vm8, %v1429_v62, %v591_v4 }
 0x385   : > { %v600_v7 = vsel %vm597_vm9, %v599_v5, %v595_v6 }
 0x386   : > { %v602_v8 = vmul.f32 2.0, %v600_v7  ;;  %v604_v12 = vmul.f32 %v600_v7, %v547_v49 }
 0x388   : > { %v1321_v9 = vadd.f32 -1.0, %v602_v8 }
 0x38a   : > { %606 = vrot.lane.b32.xlu2 %v1321_v9, %s1618_s24 }
 0x3e4   : > { %v607_v10 = vpop.permute.xlu2 %606 }
 0x3e5   : > { %v609_v11 = vmul.f32 %v607_v10, %v600_v7 }
 0x3e7   : > { %611 = vrot.lane.b32.xlu0 %v609_v11, %s1619_s19 }
 0x459   : > { %v612_v13 = vpop.permute.xlu0 %611 }
 0x45a   : > { %v614_v14 = vadd.f32 %v612_v13, %v604_v12 }
 0x45c   : > { %1430 = vtanh.f32 %v614_v14 }
 0x462   : > { %v1431_v15 = vpop.eup %1430 }
 0x463   : > { %617 = vrot.lane.b32.xlu1 %v1431_v15, %s1618_s24  ;;  %v395_v15 = vld [vmem:[#allocation4 + $0x20] sm:$0xff] }
 0x464   : > { %1312 = vmatmul.msk.f32.gmra.mxu0 %vm407_vm1, %v395_v15 }
 0x4d5   : > { %v618_v16 = vpop.permute.xlu1 %617 }
 0x4d6   : > { %v620_v17 = vmul.f32 %v618_v16, %v600_v7 }
 0x4d8   : > { %622 = vrot.lane.b32.xlu2 %v620_v17, %s1619_s19 }
 0x4e1   : > { %v461_v17 = vpop.f32.mrf.mxu0 }
 0x4e2   : > { %v462_v18 = vadd.f32 %v1902_v24, %v461_v17 }
 0x532   : > { %v623_v19 = vpop.permute.xlu2 %622 }
 0x533   : > { %625 = vst.msk [vmem:[#allocation5 + $0x8] sm:$0xff] %vm407_vm1, %v623_v19  ;;  %1322 = vmatmul.msk.f32.vlgmr.msra.gmra.mxu3 %vm407_vm1, %v623_v19 }
 0x5b6   : > { %v646_v25 = vpop.f32.mrf.mxu3 }
 0x5b7   : > { %v649_v26 = vadd.f32 %v646_v25, %v456_v23 }
 0x5b9   : > { %v1323_v27 = vmul.f32 -1.442695, %v649_v26 }
 0x5bb   : > { %1432 = vpow2.f32 %v1323_v27 }
 0x5c1   : > { %v1433_v28 = vpop.eup %1432 }
 0x5c2   : > { %v653_v29 = vadd.f32 1.0, %v1433_v28 }
 0x5c4   : > { %1434 = vrcp.f32 %v653_v29  ;;  %v665_v33 = vand.u32 2147483648, %v653_v29  ;;  %v663_v35 = vand.u32 2147483647, %v653_v29  ;;  %vm659_vm11 = vweird.f32 %v653_v29 }
 0x5c6   : > { %v666_v37 = vor.u32 1.1754944e-38, %v665_v33  ;;  %vm664_vm13 = vcmp.eq.f32.partialorder %v663_v35, 8.507059e+37 }
 0x5ca   : > { %v1435_v30 = vpop.eup %1434 }
 0x5cb   : > { %v655_v31 = vmul.f32 %v1435_v30, %v653_v29  ;;  %vm660_vm10 = vweird.f32 %v1435_v30 }
 0x5cc   : > { %vm661_vm12 = vmor %vm659_vm11, %vm660_vm10 }
 0x5cd   : > { %v656_v32 = vsub.f32 1.0, %v655_v31 }
 0x5cf   : > { %v657_v34 = vmul.f32 %v1435_v30, %v656_v32 }
 0x5d1   : > { %v658_v36 = vadd.f32 %v1435_v30, %v657_v34 }
 0x5d3   : > { %v662_v38 = vsel %vm661_vm12, %v1435_v30, %v658_v36 }
 0x5d4   : > { %v667_v39 = vsel %vm664_vm13, %v666_v37, %v662_v38 }
 0x5d5   : > { %v669_v40 = vmul.f32 2.0, %v667_v39  ;;  %v671_v44 = vmul.f32 %v667_v39, %v614_v14 }
 0x5d7   : > { %v1324_v41 = vadd.f32 -1.0, %v669_v40 }
 0x5d9   : > { %673 = vrot.lane.b32.xlu0 %v1324_v41, %s1618_s24 }
 0x64b   : > { %v674_v42 = vpop.permute.xlu0 %673 }
 0x64c   : > { %v676_v43 = vmul.f32 %v674_v42, %v667_v39 }
 0x64e   : > { %678 = vrot.lane.b32.xlu1 %v676_v43, %s1619_s19 }
 0x6c0   : > { %v679_v45 = vpop.permute.xlu1 %678 }
 0x6c1   : > { %v681_v46 = vadd.f32 %v679_v45, %v671_v44 }
 0x6c3   : > { %1436 = vtanh.f32 %v681_v46 }
 0x6c9   : > { %v1437_v47 = vpop.eup %1436 }
 0x6ca   : > { %684 = vrot.lane.b32.xlu2 %v1437_v47, %s1618_s24  ;;  %v396_v47 = vld [vmem:[#allocation4 + $0x28] sm:$0xff] }
 0x6cb   : > { %1313 = vmatmul.msk.f32.gmra.mxu0 %vm407_vm1, %v396_v47 }
 0x724   : > { %v685_v49 = vpop.permute.xlu2 %684 }
 0x725   : > { %v687_v50 = vmul.f32 %v685_v49, %v667_v39 }
 0x727   : > { %689 = vrot.lane.b32.xlu0 %v687_v50, %s1619_s19 }
 0x748   : > { %v464_v49 = vpop.f32.mrf.mxu0 }
 0x749   : > { %v465_v50 = vadd.f32 %v1902_v24, %v464_v49 }
 0x799   : > { %v690_v51 = vpop.permute.xlu0 %689 }
 0x79a   : > { %692 = vst.msk [vmem:[#allocation5 + $0x10] sm:$0xff] %vm407_vm1, %v690_v51  ;;  %1325 = vmatmul.msk.f32.vlgmr.msra.gmra.mxu1 %vm407_vm1, %v690_v51 }
 0x817   : > { %v713_v54 = vpop.f32.mrf.mxu1 }
 0x818   : > { %v716_v55 = vadd.f32 %v713_v54, %v459_v53 }
 0x81a   : > { %v1326_v56 = vmul.f32 -1.442695, %v716_v55 }
 0x81c   : > { %1438 = vpow2.f32 %v1326_v56 }
 0x822   : > { %v1439_v57 = vpop.eup %1438 }
 0x823   : > { %v720_v58 = vadd.f32 1.0, %v1439_v57 }
 0x825   : > { %1440 = vrcp.f32 %v720_v58  ;;  %v732_v62 = vand.u32 2147483648, %v720_v58  ;;  %v730_v0 = vand.u32 2147483647, %v720_v58  ;;  %vm726_vm15 = vweird.f32 %v720_v58 }
 0x827   : > { %v733_v2 = vor.u32 1.1754944e-38, %v732_v62  ;;  %vm731_vm2 = vcmp.eq.f32.partialorder %v730_v0, 8.507059e+37 }
 0x82b   : > { %v1441_v59 = vpop.eup %1440 }
 0x82c   : > { %v722_v60 = vmul.f32 %v1441_v59, %v720_v58  ;;  %vm727_vm14 = vweird.f32 %v1441_v59 }
 0x82d   : > { %vm728_vm0 = vmor %vm726_vm15, %vm727_vm14 }
 0x82e   : > { %v723_v61 = vsub.f32 1.0, %v722_v60 }
 0x830   : > { %v724_v63 = vmul.f32 %v1441_v59, %v723_v61 }
 0x832   : > { %v725_v1 = vadd.f32 %v1441_v59, %v724_v63 }
 0x834   : > { %v729_v3 = vsel %vm728_vm0, %v1441_v59, %v725_v1 }
 0x835   : > { %v734_v4 = vsel %vm731_vm2, %v733_v2, %v729_v3 }
 0x836   : > { %v736_v5 = vmul.f32 2.0, %v734_v4  ;;  %v738_v9 = vmul.f32 %v734_v4, %v681_v46 }
 0x838   : > { %v1327_v6 = vadd.f32 -1.0, %v736_v5 }
 0x83a   : > { %740 = vrot.lane.b32.xlu1 %v1327_v6, %s1618_s24 }
 0x8ac   : > { %v741_v7 = vpop.permute.xlu1 %740 }
 0x8ad   : > { %v743_v8 = vmul.f32 %v741_v7, %v734_v4 }
 0x8af   : > { %745 = vrot.lane.b32.xlu2 %v743_v8, %s1619_s19 }
 0x909   : > { %v746_v10 = vpop.permute.xlu2 %745 }
 0x90a   : > { %v748_v11 = vadd.f32 %v746_v10, %v738_v9 }
 0x90c   : > { %1442 = vtanh.f32 %v748_v11 }
 0x912   : > { %v1443_v12 = vpop.eup %1442 }
 0x913   : > { %751 = vrot.lane.b32.xlu0 %v1443_v12, %s1618_s24 }
 0x985   : > { %v752_v13 = vpop.permute.xlu0 %751 }
 0x986   : > { %v754_v14 = vmul.f32 %v752_v13, %v734_v4  ;;  %v468_v13 = vadd.f32 %v1902_v24, %v1893_v21 }
 0x988   : > { %756 = vrot.lane.b32.xlu1 %v754_v14, %s1619_s19 }
 0x9fa   : > { %v757_v16 = vpop.permute.xlu1 %756 }
 0x9fb   : > { %759 = vst.msk [vmem:[#allocation5 + $0x18] sm:$0xff] %vm407_vm1, %v757_v16  ;;  %1328 = vmatmul.msk.f32.vlgmr.msrb.gmra.mxu2 %vm407_vm1, %v757_v16 }
 0xa7e   : > { %v780_v19 = vpop.f32.mrf.mxu2 }
 0xa7f   : > { %v783_v20 = vadd.f32 %v780_v19, %v462_v18 }
 0xa81   : > { %v1329_v23 = vmul.f32 -1.442695, %v783_v20 }
 0xa83   : > { %1444 = vpow2.f32 %v1329_v23 }
 0xa89   : > { %v1445_v25 = vpop.eup %1444 }
 0xa8a   : > { %v787_v26 = vadd.f32 1.0, %v1445_v25 }
 0xa8c   : > { %1446 = vrcp.f32 %v787_v26  ;;  %v799_v30 = vand.u32 2147483648, %v787_v26  ;;  %v797_v32 = vand.u32 2147483647, %v787_v26  ;;  %vm793_vm4 = vweird.f32 %v787_v26 }
 0xa8e   : > { %v800_v34 = vor.u32 1.1754944e-38, %v799_v30  ;;  %vm798_vm6 = vcmp.eq.f32.partialorder %v797_v32, 8.507059e+37 }
 0xa92   : > { %v1447_v27 = vpop.eup %1446 }
 0xa93   : > { %v789_v28 = vmul.f32 %v1447_v27, %v787_v26  ;;  %vm794_vm3 = vweird.f32 %v1447_v27 }
 0xa94   : > { %vm795_vm5 = vmor %vm793_vm4, %vm794_vm3 }
 0xa95   : > { %v790_v29 = vsub.f32 1.0, %v789_v28 }
 0xa97   : > { %v791_v31 = vmul.f32 %v1447_v27, %v790_v29 }
 0xa99   : > { %v792_v33 = vadd.f32 %v1447_v27, %v791_v31 }
 0xa9b   : > { %v796_v35 = vsel %vm795_vm5, %v1447_v27, %v792_v33 }
 0xa9c   : > { %v801_v36 = vsel %vm798_vm6, %v800_v34, %v796_v35 }
 0xa9d   : > { %v803_v37 = vmul.f32 2.0, %v801_v36  ;;  %v805_v41 = vmul.f32 %v801_v36, %v748_v11 }
 0xa9f   : > { %v1330_v38 = vadd.f32 -1.0, %v803_v37 }
 0xaa1   : > { %807 = vrot.lane.b32.xlu2 %v1330_v38, %s1618_s24 }
 0xafb   : > { %v808_v39 = vpop.permute.xlu2 %807 }
 0xafc   : > { %v810_v40 = vmul.f32 %v808_v39, %v801_v36 }
 0xafe   : > { %812 = vrot.lane.b32.xlu0 %v810_v40, %s1619_s19 }
 0xb70   : > { %v813_v42 = vpop.permute.xlu0 %812 }
 0xb71   : > { %v815_v43 = vadd.f32 %v813_v42, %v805_v41  ;;  %v471_v42 = vadd.f32 %v1902_v24, %v1895_v22 }
 0xb73   : > { %1448 = vtanh.f32 %v815_v43 }
 0xb79   : > { %v1449_v44 = vpop.eup %1448 }
 0xb7a   : > { %818 = vrot.lane.b32.xlu1 %v1449_v44, %s1618_s24 }
 0xbec   : > { %v819_v45 = vpop.permute.xlu1 %818 }
 0xbed   : > { %v821_v46 = vmul.f32 %v819_v45, %v801_v36 }
 0xbef   : > { %823 = vrot.lane.b32.xlu2 %v821_v46, %s1619_s19 }
 0xc49   : > { %v824_v48 = vpop.permute.xlu2 %823 }
 0xc4a   : > { %826 = vst.msk [vmem:[#allocation5 + $0x20] sm:$0xff] %vm407_vm1, %v824_v48  ;;  %1331 = vmatmul.msk.f32.vlgmr.msrb.gmra.mxu3 %vm407_vm1, %v824_v48 }
 0xccd   : > { %v847_v51 = vpop.f32.mrf.mxu3 }
 0xcce   : > { %v850_v52 = vadd.f32 %v847_v51, %v465_v50 }
 0xcd0   : > { %v1332_v53 = vmul.f32 -1.442695, %v850_v52 }
 0xcd2   : > { %1450 = vpow2.f32 %v1332_v53 }
 0xcd8   : > { %v1451_v54 = vpop.eup %1450 }
 0xcd9   : > { %v854_v55 = vadd.f32 1.0, %v1451_v54 }
 0xcdb   : > { %1452 = vrcp.f32 %v854_v55  ;;  %v866_v59 = vand.u32 2147483648, %v854_v55  ;;  %v864_v61 = vand.u32 2147483647, %v854_v55  ;;  %vm860_vm8 = vweird.f32 %v854_v55 }
 0xcdd   : > { %v867_v63 = vor.u32 1.1754944e-38, %v866_v59  ;;  %vm865_vm10 = vcmp.eq.f32.partialorder %v864_v61, 8.507059e+37 }
 0xce1   : > { %v1453_v56 = vpop.eup %1452 }
 0xce2   : > { %v856_v57 = vmul.f32 %v1453_v56, %v854_v55  ;;  %vm861_vm7 = vweird.f32 %v1453_v56 }
 0xce3   : > { %vm862_vm9 = vmor %vm860_vm8, %vm861_vm7 }
 0xce4   : > { %v857_v58 = vsub.f32 1.0, %v856_v57 }
 0xce6   : > { %v858_v60 = vmul.f32 %v1453_v56, %v857_v58 }
 0xce8   : > { %v859_v62 = vadd.f32 %v1453_v56, %v858_v60 }
 0xcea   : > { %v863_v0 = vsel %vm862_vm9, %v1453_v56, %v859_v62 }
 0xceb   : > { %v868_v1 = vsel %vm865_vm10, %v867_v63, %v863_v0 }
 0xcec   : > { %v870_v2 = vmul.f32 2.0, %v868_v1  ;;  %v872_v6 = vmul.f32 %v868_v1, %v815_v43 }
 0xcee   : > { %v1333_v3 = vadd.f32 -1.0, %v870_v2 }
 0xcf0   : > { %874 = vrot.lane.b32.xlu0 %v1333_v3, %s1618_s24 }
 0xd62   : > { %v875_v4 = vpop.permute.xlu0 %874 }
 0xd63   : > { %v877_v5 = vmul.f32 %v875_v4, %v868_v1 }
 0xd65   : > { %879 = vrot.lane.b32.xlu1 %v877_v5, %s1619_s19 }
 0xdd7   : > { %v880_v7 = vpop.permute.xlu1 %879 }
 0xdd8   : > { %v882_v8 = vadd.f32 %v880_v7, %v872_v6 }
 0xdda   : > { %1454 = vtanh.f32 %v882_v8 }
 0xde0   : > { %v1455_v9 = vpop.eup %1454 }
 0xde1   : > { %885 = vrot.lane.b32.xlu2 %v1455_v9, %s1618_s24 }
 0xe3b   : > { %v886_v10 = vpop.permute.xlu2 %885 }
 0xe3c   : > { %v888_v11 = vmul.f32 %v886_v10, %v868_v1 }
 0xe3e   : > { %890 = vrot.lane.b32.xlu0 %v888_v11, %s1619_s19 }
 0xeb0   : > { %v891_v12 = vpop.permute.xlu0 %890 }
 0xeb1   : > { %893 = vst.msk [vmem:[#allocation5 + $0x28] sm:$0xff] %vm407_vm1, %v891_v12  ;;  %1334 = vmatmul.msk.f32.vlgmr.msrb.gmra.mxu1 %vm407_vm1, %v891_v12 }
 0xf2e   : > { %v914_v14 = vpop.f32.mrf.mxu1 }
 0xf2f   : > { %v917_v15 = vadd.f32 %v914_v14, %v468_v13 }
 0xf31   : > { %v1335_v16 = vmul.f32 -1.442695, %v917_v15 }
 0xf33   : > { %1456 = vpow2.f32 %v1335_v16 }
 0xf39   : > { %v1457_v17 = vpop.eup %1456 }
 0xf3a   : > { %v921_v18 = vadd.f32 1.0, %v1457_v17 }
 0xf3c   : > { %1458 = vrcp.f32 %v921_v18  ;;  %v933_v25 = vand.u32 2147483648, %v921_v18  ;;  %v931_v27 = vand.u32 2147483647, %v921_v18  ;;  %vm927_vm12 = vweird.f32 %v921_v18 }
 0xf3e   : > { %v934_v29 = vor.u32 1.1754944e-38, %v933_v25  ;;  %vm932_vm14 = vcmp.eq.f32.partialorder %v931_v27, 8.507059e+37 }
 0xf42   : > { %v1459_v19 = vpop.eup %1458 }
 0xf43   : > { %v923_v20 = vmul.f32 %v1459_v19, %v921_v18  ;;  %vm928_vm11 = vweird.f32 %v1459_v19 }
 0xf44   : > { %vm929_vm13 = vmor %vm927_vm12, %vm928_vm11 }
 0xf45   : > { %v924_v23 = vsub.f32 1.0, %v923_v20 }
 0xf47   : > { %v925_v26 = vmul.f32 %v1459_v19, %v924_v23 }
 0xf49   : > { %v926_v28 = vadd.f32 %v1459_v19, %v925_v26 }
 0xf4b   : > { %v930_v30 = vsel %vm929_vm13, %v1459_v19, %v926_v28 }
 0xf4c   : > { %v935_v21 = vsel %vm932_vm14, %v934_v29, %v930_v30 }
 0xf4d   : > { %v937_v31 = vmul.f32 2.0, %v935_v21  ;;  %v939_v35 = vmul.f32 %v935_v21, %v882_v8 }
 0xf4f   : > { %v1336_v32 = vadd.f32 -1.0, %v937_v31 }
 0xf51   : > { %941 = vrot.lane.b32.xlu1 %v1336_v32, %s1618_s24 }
 0xfc3   : > { %v942_v33 = vpop.permute.xlu1 %941 }
 0xfc4   : > { %v944_v34 = vmul.f32 %v942_v33, %v935_v21 }
 0xfc6   : > { %946 = vrot.lane.b32.xlu2 %v944_v34, %s1619_s19 }
0x1020   : > { %v947_v36 = vpop.permute.xlu2 %946 }
0x1021   : > { %v949_v37 = vadd.f32 %v947_v36, %v939_v35 }
0x1023   : > { %1460 = vtanh.f32 %v949_v37 }
0x1029   : > { %v1461_v38 = vpop.eup %1460 }
0x102a   : > { %952 = vrot.lane.b32.xlu0 %v1461_v38, %s1618_s24 }
0x109c   : > { %v953_v39 = vpop.permute.xlu0 %952 }
0x109d   : > { %v955_v40 = vmul.f32 %v953_v39, %v935_v21 }
0x109f   : > { %957 = vrot.lane.b32.xlu1 %v955_v40, %s1619_s19 }
0x1111   : > { %v958_v41 = vpop.permute.xlu1 %957 }
0x1112   : > { %960 = vst.msk [vmem:[#allocation5 + $0x30] sm:$0xff] %vm407_vm1, %v958_v41  ;;  %1337 = vmatmul.msk.f32.vlgmr.msra.gmra.mxu2 %vm407_vm1, %v958_v41 }
0x1195   : > { %v981_v43 = vpop.f32.mrf.mxu2 }
0x1196   : > { %v984_v44 = vadd.f32 %v981_v43, %v471_v42 }
0x1198   : > { %v1338_v45 = vmul.f32 -1.442695, %v984_v44 }
0x119a   : > { %1462 = vpow2.f32 %v1338_v45 }
0x11a0   : > { %v1463_v46 = vpop.eup %1462 }
0x11a1   : > { %v988_v47 = vadd.f32 1.0, %v1463_v46 }
0x11a3   : > { %1464 = vrcp.f32 %v988_v47  ;;  %v1000_v51 = vand.u32 2147483648, %v988_v47  ;;  %v998_v53 = vand.u32 2147483647, %v988_v47  ;;  %vm994_vm0 = vweird.f32 %v988_v47 }
0x11a5   : > { %v1001_v55 = vor.u32 1.1754944e-38, %v1000_v51  ;;  %vm999_vm3 = vcmp.eq.f32.partialorder %v998_v53, 8.507059e+37 }
0x11a9   : > { %v1465_v48 = vpop.eup %1464 }
0x11aa   : > { %v990_v49 = vmul.f32 %v1465_v48, %v988_v47  ;;  %vm995_vm15 = vweird.f32 %v1465_v48 }
0x11ab   : > { %vm996_vm2 = vmor %vm994_vm0, %vm995_vm15 }
0x11ac   : > { %v991_v50 = vsub.f32 1.0, %v990_v49 }
0x11ae   : > { %v992_v52 = vmul.f32 %v1465_v48, %v991_v50 }
0x11b0   : > { %v993_v54 = vadd.f32 %v1465_v48, %v992_v52 }
0x11b2   : > { %v997_v56 = vsel %vm996_vm2, %v1465_v48, %v993_v54 }
0x11b3   : > { %v1002_v22 = vsel %vm999_vm3, %v1001_v55, %v997_v56 }
0x11b4   : > { %v1004_v24 = vmul.f32 2.0, %v1002_v22  ;;  %v1006_v60 = vmul.f32 %v1002_v22, %v949_v37 }
0x11b6   : > { %v1339_v57 = vadd.f32 -1.0, %v1004_v24 }
0x11b8   : > { %1008 = vrot.lane.b32.xlu2 %v1339_v57, %s1618_s24 }
0x1212   : > { %v1009_v58 = vpop.permute.xlu2 %1008 }
0x1213   : > { %v1011_v59 = vmul.f32 %v1009_v58, %v1002_v22 }
0x1215   : > { %1013 = vrot.lane.b32.xlu0 %v1011_v59, %s1619_s19 }
0x1287   : > { %v1014_v61 = vpop.permute.xlu0 %1013 }
0x1288   : > { %v1016_v62 = vadd.f32 %v1014_v61, %v1006_v60 }
0x128a   : > { %1466 = vtanh.f32 %v1016_v62  ;;  %1030 = vrot.lane.b32.xlu0 %v1016_v62, %s1620_s21 }
0x1290   : > { %v1467_v63 = vpop.eup %1466 }
0x1291   : > { %1019 = vrot.lane.b32.xlu1 %v1467_v63, %s1618_s24 }
0x12fc   : > { %v1031_v0 = vpop.permute.xlu0 %1030 }
0x12fd   : > { %1033 = vst.msk [vmem:[#allocation3] sm:$0xff] %vm407_vm1, %v1031_v0 }
0x1303   : > { %v1020_v1 = vpop.permute.xlu1 %1019 }
0x1304   : > { %v1022_v2 = vmul.f32 %v1020_v1, %v1002_v22 }
0x1306   : > { %1024 = vrot.lane.b32.xlu2 %v1022_v2, %s1619_s19 }
0x135e   : > { %1037 = sbr.rel (%p1340_p7) target bundleno = 4979 (0x1373), region = 64 }
0x1360   : > { %v1025_v3 = vpop.permute.xlu2 %1024 }
0x1361   : > { %1027 = vst.msk [vmem:[#allocation5 + $0x38] sm:$0xff] %vm407_vm1, %v1025_v3 }
0x1362   : > { %1028 = vst.msk [vmem:[#allocation2] sm:$0xff] %vm407_vm1, %v1025_v3 }
0x1363   : > { %v1038_v4 = vld [vmem:[#allocation5] sm:$0xff]  ;;  %v1039_v5 = vld [vmem:[#allocation5 + $0x8] sm:$0xff]  ;;  %v1040_v6 = vld [vmem:[#allocation5 + $0x10] sm:$0xff] }
0x1364   : > { %1468 = vtanh.f32 %v1038_v4  ;;  %v1041_v7 = vld [vmem:[#allocation5 + $0x18] sm:$0xff]  ;;  %v1042_v8 = vld [vmem:[#allocation5 + $0x20] sm:$0xff]  ;;  %v1043_v9 = vld [vmem:[#allocation5 + $0x28] sm:$0xff] }
0x1365   : > { %1470 = vtanh.f32 %v1039_v5  ;;  %v1044_v10 = vld [vmem:[#allocation5 + $0x30] sm:$0xff] }
0x1366   : > { %1472 = vtanh.f32 %v1040_v6 }
0x1367   : > { %1474 = vtanh.f32 %v1041_v7 }
0x1368   : > { %1476 = vtanh.f32 %v1042_v8  ;;  %v1045_v11 = vld [vmem:[#allocation5 + $0x38] sm:$0xff] }
0x1369   : > { %1478 = vtanh.f32 %v1043_v9 }
0x136a   : > { %v1469_v12 = vpop.eup %1468  ;;  %1480 = vtanh.f32 %v1044_v10 }
0x136b   : > { %v1471_v13 = vpop.eup %1470  ;;  %1054 = vst.msk [vmem:[#allocation4] sm:$0xff] %vm407_vm1, %v1469_v12  ;;  %1482 = vtanh.f32 %v1045_v11 }
0x136c   : > { %v1473_v14 = vpop.eup %1472  ;;  %1055 = vst.msk [vmem:[#allocation4 + $0x8] sm:$0xff] %vm407_vm1, %v1471_v13 }
0x136d   : > { %v1475_v15 = vpop.eup %1474  ;;  %1056 = vst.msk [vmem:[#allocation4 + $0x10] sm:$0xff] %vm407_vm1, %v1473_v14 }
0x136e   : > { %v1477_v16 = vpop.eup %1476  ;;  %1057 = vst.msk [vmem:[#allocation4 + $0x18] sm:$0xff] %vm407_vm1, %v1475_v15 }
0x136f   : > { %v1479_v17 = vpop.eup %1478  ;;  %1058 = vst.msk [vmem:[#allocation4 + $0x20] sm:$0xff] %vm407_vm1, %v1477_v16 }
0x1370   : > { %v1481_v18 = vpop.eup %1480  ;;  %1059 = vst.msk [vmem:[#allocation4 + $0x28] sm:$0xff] %vm407_vm1, %v1479_v17 }
0x1371   : > { %v1483_v19 = vpop.eup %1482  ;;  %1060 = vst.msk [vmem:[#allocation4 + $0x30] sm:$0xff] %vm407_vm1, %v1481_v18 }
0x1372   : > { %1061 = vst.msk [vmem:[#allocation4 + $0x38] sm:$0xff] %vm407_vm1, %v1483_v19 }
0x1373 PF: > { %p1341_p5 = scmp.eq.s32.totalorder %s1675_s25, 4 }
0x1375   : > { %1065 = sbr.rel (%p1341_p5) target bundleno = 4997 (0x1385), region = 68 }
0x137a   : > { %v1066_v20 = vld [vmem:[#allocation5] sm:$0xff]  ;;  %v1067_v23 = vld [vmem:[#allocation5 + $0x8] sm:$0xff]  ;;  %v1068_v25 = vld [vmem:[#allocation5 + $0x10] sm:$0xff] }
0x137b   : > { %v1074_v26 = vmax.f32 %v1066_v20, 0.0  ;;  %v1075_v27 = vmax.f32 %v1067_v23, 0.0  ;;  %v1076_v28 = vmax.f32 %v1068_v25, 0.0  ;;  %v1069_v29 = vld [vmem:[#allocation5 + $0x18] sm:$0xff]  ;;  %v1070_v30 = vld [vmem:[#allocation5 + $0x20] sm:$0xff]  ;;  %v1071_v21 = vld [vmem:[#allocation5 + $0x28] sm:$0xff] }
0x137c   : > { %v1077_v31 = vmax.f32 %v1069_v29, 0.0  ;;  %v1072_v32 = vld [vmem:[#allocation5 + $0x30] sm:$0xff]  ;;  %v1078_v33 = vmax.f32 %v1070_v30, 0.0  ;;  %v1073_v34 = vld [vmem:[#allocation5 + $0x38] sm:$0xff]  ;;  %v1079_v35 = vmax.f32 %v1071_v21, 0.0 }
0x137d   : > { %1082 = vst.msk [vmem:[#allocation4] sm:$0xff] %vm407_vm1, %v1074_v26  ;;  %v1080_v36 = vmax.f32 %v1072_v32, 0.0  ;;  %v1081_v37 = vmax.f32 %v1073_v34, 0.0 }
0x137e   : > { %1083 = vst.msk [vmem:[#allocation4 + $0x8] sm:$0xff] %vm407_vm1, %v1075_v27 }
0x137f   : > { %1084 = vst.msk [vmem:[#allocation4 + $0x10] sm:$0xff] %vm407_vm1, %v1076_v28 }
0x1380   : > { %1085 = vst.msk [vmem:[#allocation4 + $0x18] sm:$0xff] %vm407_vm1, %v1077_v31 }
0x1381   : > { %1086 = vst.msk [vmem:[#allocation4 + $0x20] sm:$0xff] %vm407_vm1, %v1078_v33 }
0x1382   : > { %1087 = vst.msk [vmem:[#allocation4 + $0x28] sm:$0xff] %vm407_vm1, %v1079_v35 }
0x1383   : > { %1088 = vst.msk [vmem:[#allocation4 + $0x30] sm:$0xff] %vm407_vm1, %v1080_v36 }
0x1384   : > { %1089 = vst.msk [vmem:[#allocation4 + $0x38] sm:$0xff] %vm407_vm1, %v1081_v37 }
0x1385 PF: > { %v1101_v38 = vld [vmem:[%s1808_s15 + $0x18] sm:$0xff]  ;;  %v1100_v39 = vld [vmem:[%s1808_s15 + $0x10] sm:$0xff]  ;;  %v1099_v40 = vld [vmem:[%s1808_s15 + $0x8] sm:$0xff]  ;;  %p1350_p13 = scmp.ne.s32.totalorder %s1675_s25, 5 }
0x1386   : > { %1360 = vmatpush.msra.mxu3 %v1101_v38  ;;  %1142 = vmatpush.msra.mxu1 %v1101_v38  ;;  %v1098_v41 = vld [vmem:[%s1808_s15] sm:$0xff]  ;;  %v1091_v45 = vld [vmem:[#allocation4 + $0x8] sm:$0xff]  ;;  %v1092_v47 = vld [vmem:[#allocation4 + $0x10] sm:$0xff] }
0x1387   : > { %v1090_v43 = vld [vmem:[#allocation4] sm:$0xff]  ;;  %v1093_v49 = vld [vmem:[#allocation4 + $0x18] sm:$0xff]  ;;  %v1484_v50 = vld [vmem:[%s367_s2] ss:$0 sm:$0xff] }
0x1388   : > { %1361 = vmatpush.msra.mxu3 %v1100_v39  ;;  %1143 = vmatpush.msra.mxu1 %v1100_v39  ;;  %v1094_v42 = vld [vmem:[#allocation4 + $0x20] sm:$0xff] }
0x1389   : > { %v1095_v44 = vld [vmem:[#allocation4 + $0x28] sm:$0xff] }
0x138a   : > { %1362 = vmatpush.msra.mxu3 %v1099_v40  ;;  %1144 = vmatpush.msra.mxu1 %v1099_v40  ;;  %v1096_v46 = vld [vmem:[#allocation4 + $0x30] sm:$0xff] }
0x138b   : > { %v1097_v48 = vld [vmem:[#allocation4 + $0x38] sm:$0xff] }
0x138c   : > { %1363 = vmatpush.msra.mxu3 %v1098_v41  ;;  %1145 = vmatpush.msra.mxu1 %v1098_v41 }
0x138d   : > { %1346 = vmatmul.msk.f32.vlgmr.msra.gmra.mxu3 %vm407_vm1, %v1094_v42  ;;  %1342 = vmatmul.msk.f32.vlgmr.msra.gmra.mxu1 %vm407_vm1, %v1090_v43 }
0x1395   : > { %1347 = vmatmul.msk.f32.gmra.mxu3 %vm407_vm1, %v1095_v44  ;;  %1343 = vmatmul.msk.f32.gmra.mxu1 %vm407_vm1, %v1091_v45 }
0x139d   : > { %1348 = vmatmul.msk.f32.gmra.mxu3 %vm407_vm1, %v1096_v46  ;;  %1344 = vmatmul.msk.f32.gmra.mxu1 %vm407_vm1, %v1092_v47 }
0x13a5   : > { %1349 = vmatmul.msk.f32.gmra.mxu3 %vm407_vm1, %v1097_v48  ;;  %1345 = vmatmul.msk.f32.gmra.mxu1 %vm407_vm1, %v1093_v49 }
0x140a   : > { %v1147_v51 = vpop.f32.mrf.mxu1 }
0x140b   : > { %v1148_v52 = vadd.f32 %v1484_v50, %v1147_v51 }
0x140d   : > { %1171 = vst.msk [vmem:[#allocation4] sm:$0xff] %vm407_vm1, %v1148_v52 }
0x1410   : > { %v1159_v53 = vpop.f32.mrf.mxu3 }
0x1411   : > { %v1160_v54 = vadd.f32 %v1484_v50, %v1159_v53 }
0x1412   : > { %v1150_v55 = vpop.f32.mrf.mxu1 }
0x1413   : > { %1175 = vst.msk [vmem:[#allocation4 + $0x20] sm:$0xff] %vm407_vm1, %v1160_v54  ;;  %v1151_v56 = vadd.f32 %v1484_v50, %v1150_v55 }
0x1415   : > { %1172 = vst.msk [vmem:[#allocation4 + $0x8] sm:$0xff] %vm407_vm1, %v1151_v56 }
0x1418   : > { %v1162_v22 = vpop.f32.mrf.mxu3 }
0x1419   : > { %v1163_v24 = vadd.f32 %v1484_v50, %v1162_v22 }
0x141a   : > { %v1153_v57 = vpop.f32.mrf.mxu1 }
0x141b   : > { %1176 = vst.msk [vmem:[#allocation4 + $0x28] sm:$0xff] %vm407_vm1, %v1163_v24  ;;  %v1154_v58 = vadd.f32 %v1484_v50, %v1153_v57 }
0x141d   : > { %1173 = vst.msk [vmem:[#allocation4 + $0x10] sm:$0xff] %vm407_vm1, %v1154_v58 }
0x1420   : > { %v1165_v59 = vpop.f32.mrf.mxu3 }
0x1421   : > { %v1166_v60 = vadd.f32 %v1484_v50, %v1165_v59 }
0x1422   : > { %v1156_v61 = vpop.f32.mrf.mxu1 }
0x1423   : > { %1177 = vst.msk [vmem:[#allocation4 + $0x30] sm:$0xff] %vm407_vm1, %v1166_v60  ;;  %v1157_v62 = vadd.f32 %v1484_v50, %v1156_v61 }
0x1425   : > { %1174 = vst.msk [vmem:[#allocation4 + $0x18] sm:$0xff] %vm407_vm1, %v1157_v62 }
0x1427   : > { %1182 = sbr.rel (%p1350_p13) target bundleno = 5172 (0x1434), region = 72 }
0x1428   : > { %v1168_v63 = vpop.f32.mrf.mxu3 }
0x1429   : > { %v1169_v0 = vadd.f32 %v1484_v50, %v1168_v63 }
0x142b   : > { %1178 = vst.msk [vmem:[#allocation4 + $0x38] sm:$0xff] %vm407_vm1, %v1169_v0 }
0x142c   : > { %1183 = vst.msk [vmem:[%s2068_s6] sm:$0xff] %vm407_vm1, %v1148_v52 }
0x142d   : > { %1184 = vst.msk [vmem:[%s2068_s6 + $0x8] sm:$0xff] %vm407_vm1, %v1151_v56 }
0x142e   : > { %1185 = vst.msk [vmem:[%s2068_s6 + $0x10] sm:$0xff] %vm407_vm1, %v1154_v58 }
0x142f   : > { %1186 = vst.msk [vmem:[%s2068_s6 + $0x18] sm:$0xff] %vm407_vm1, %v1157_v62 }
0x1430   : > { %1187 = vst.msk [vmem:[%s2068_s6 + $0x20] sm:$0xff] %vm407_vm1, %v1160_v54 }
0x1431   : > { %1188 = vst.msk [vmem:[%s2068_s6 + $0x28] sm:$0xff] %vm407_vm1, %v1163_v24 }
0x1432   : > { %1189 = vst.msk [vmem:[%s2068_s6 + $0x30] sm:$0xff] %vm407_vm1, %v1166_v60 }
0x1433   : > { %1190 = vst.msk [vmem:[%s2068_s6 + $0x38] sm:$0xff] %vm407_vm1, %v1169_v0 }
0x1434 PF: > { %p19_p0 = scmp.ge.s32.totalorder %s1678_s26, 8   ;;  %s2076_s21 = smov %s1605_s22 }
0x1435   : > { %s2077_s22 = smov %s1609_s23  ;;  %s2078_s23 = smov %s1688_s29 }
0x1436   : > { %s2079_s24 = smov %s1678_s26  ;;  %21 = sbr.rel (!%p19_p0) target bundleno = 8 (0x8), region = 126 }
0x143b   :  { %1202 = vsyncpa [#allocation8], 1 }
0x143c   :  { %1204 = vsyncpa [#allocation8 + $0x1], 1 }
0x143d   :  { %1205 = vsyncpa [#allocation10], 1 }
0x143e   :  { %1207 = vsyncpa [#allocation10 + $0x1], 1 }

</bundles_post_ra>
